<compile_context>
chip_gen: v7x
topology: tpu7x:2x2x1
jax: 0.10.0
libtpu: 0.0.40
codegen_flags: <defaults>
</compile_context>

<pallas_src>
import jax
import jax.numpy as jnp
from jax.experimental import pallas as pl
from jax.experimental.pallas import tpu as pltpu


def _rcnn_kernel(x_ref, lh_ref, rh_ref, wconv_ref, bconv_ref, wfc_ref, bfc_ref,
                 out_ref, acc_ref):
    # x_ref:     (TB, TS, H)  bf16 hidden-state tile (channels-last)
    # lh_ref:    (1, TB, H)   bf16 row just left of this S-tile (zeros for first tile)
    # rh_ref:    (1, TB, H)   bf16 row just right of this S-tile (zeros for last tile)
    # wconv_ref: (3, H, H)    bf16, wconv[k, ci, co] == torch_conv_weight[co, ci, k]
    # bconv_ref: (1, H)       f32
    # wfc_ref:   (H, NCP)     f32 (lane-padded fc weight)
    # bfc_ref:   (1, NCP)     f32
    # out_ref:   (TB, NCP)    f32 logits (lane-dense)
    # acc_ref:   (TB, H)      f32 running max over the sequence axis
    s_idx = pl.program_id(1)
    TB, TS, H = x_ref.shape

    @pl.when(s_idx == 0)
    def _():
        acc_ref[...] = jnp.full(acc_ref.shape, -jnp.inf, dtype=acc_ref.dtype)

    x2 = x_ref[...].reshape(TB * TS, H)

    # Center tap: conv[s] = x[s] @ W1  (f32 MXU accumulation).
    conv = jnp.dot(x2, wconv_ref[1],
                   preferred_element_type=jnp.float32).reshape(TB, TS, H)

    row = jax.lax.broadcasted_iota(jnp.int32, (1, TS, 1), 1)

    # Left-neighbor tap: conv[s] += x[s-1] @ W0.
    # Roll the matmul OUTPUT down by one row (XLU); the s==0 row of every batch is
    # wrong after the roll and is patched with the halo contribution via a select.
    y0 = jnp.dot(x2, wconv_ref[0], preferred_element_type=jnp.float32)
    y0 = pltpu.roll(y0, shift=1, axis=0).reshape(TB, TS, H)
    h0 = jnp.dot(lh_ref[0], wconv_ref[0], preferred_element_type=jnp.float32)   # (TB, H)
    conv = conv + jnp.where(row == 0, h0[:, None, :], y0)

    # Right-neighbor tap: conv[s] += x[s+1] @ W2 (roll up by one row, patch last row).
    y2 = jnp.dot(x2, wconv_ref[2], preferred_element_type=jnp.float32)
    y2 = pltpu.roll(y2, shift=TB * TS - 1, axis=0).reshape(TB, TS, H)
    h2 = jnp.dot(rh_ref[0], wconv_ref[2], preferred_element_type=jnp.float32)   # (TB, H)
    conv = conv + jnp.where(row == TS - 1, h2[:, None, :], y2)

    # Running max over the sequence axis; bias-add + ReLU are hoisted to the epilogue
    # (max is monotone and bconv is a per-channel constant, so the result is identical).
    acc_ref[...] = jnp.maximum(acc_ref[...], jnp.max(conv, axis=1))

    @pl.when(s_idx == pl.num_programs(1) - 1)
    def _():
        pooled = jnp.maximum(acc_ref[...] + bconv_ref[...], 0.0)          # f32 (TB, H)
        logits = jnp.dot(pooled, wfc_ref[...], preferred_element_type=jnp.float32)
        out_ref[...] = logits + bfc_ref[...]


def _vmem_limit_bytes():
    # ~75% of physical VMEM: 48 MiB on v7x (64 MiB/TC), 96 MiB on v5e/v6e (128 MiB).
    try:
        cap = int(pltpu.get_tpu_info().vmem_capacity_bytes)
    except Exception:
        cap = 128 * 1024 * 1024
    return max(32 * 1024 * 1024, (cap * 3) // 4)


def _pick_batch_tile(B):
    # Returns (padded_B, tb). tb must be a multiple of 8 or equal the full batch dim.
    if B <= 8:
        return B, B
    if B % 8 == 0:
        return B, 8
    return ((B + 7) // 8) * 8, 8       # pad B up to a multiple of 8, tile with 8


def _pick_seq_tile(S, tb, H, vmem_limit):
    # live bytes per sequence row ~= 3 f32 intermediates + 2x double-buffered bf16 x.
    per_row = tb * H * (3 * 4 + 2 * 2)
    cap = max(8, int(vmem_limit * 0.6) // max(per_row, 1))
    cap = min(cap, 256 if H < 1024 else 128)
    if S <= cap:
        return S
    t = (cap // 8) * 8
    while t >= 8:
        if S % t == 0:
            return t
        t -= 8
    return S      # no 8-multiple divisor; fall back to the full sequence


def rcnn_forward(hidden_states, wconv, bconv, wfc, bfc, *, tb=None, ts=None):
    """Conv1d(k=3,pad=1) + ReLU + global max-pool over sequence + linear head.

    hidden_states: (B, S, H) channels-last (BERT last_hidden_state)
    wconv: (3, H, H)  wconv[k, ci, co] == torch_conv_weight[co, ci, k]
    bconv: (1, H);  wfc: (H, NC);  bfc: (1, NC)
    """
    B, S, H = hidden_states.shape
    NC = wfc.shape[1]
    NCP = ((NC + 127) // 128) * 128           # lane-dense output width

    vmem_limit = _vmem_limit_bytes()

    Bp, tb_auto = _pick_batch_tile(B)
    if tb is None:
        tb = tb_auto
    else:
        Bp = ((B + tb - 1) // tb) * tb
    if ts is None:
        ts = _pick_seq_tile(S, tb, H, vmem_limit)
    assert S % ts == 0, "sequence tile must divide S"
    n_b, n_s = Bp // tb, S // ts

    # bf16 MXU operands for the conv (f32 accumulation inside the kernel); the tiny
    # fc weight stays f32 so the pooled vector is not quantized.
    xb = hidden_states.astype(jnp.bfloat16)
    if Bp != B:
        xb = jnp.concatenate([xb, jnp.zeros((Bp - B, S, H), jnp.bfloat16)], axis=0)
    wconv_b = wconv.astype(jnp.bfloat16)
    bconv_f = bconv.astype(jnp.float32).reshape(1, H)
    wfc_p = jnp.zeros((H, NCP), jnp.float32).at[:, :NC].set(wfc.astype(jnp.float32))
    bfc_p = jnp.zeros((1, NCP), jnp.float32).at[:, :NC].set(
        bfc.reshape(-1).astype(jnp.float32))

    # 1-row halos per S-tile (zero padding at the sequence ends), shaped (n_s, Bp, H).
    zrow = jnp.zeros((1, Bp, H), jnp.bfloat16)
    if n_s > 1:
        left = jnp.transpose(xb[:, ts - 1:S - 1:ts, :], (1, 0, 2))   # rows t*ts-1
        right = jnp.transpose(xb[:, ts::ts, :], (1, 0, 2))           # rows (t+1)*ts
        left_halo = jnp.concatenate([zrow, left], axis=0)
        right_halo = jnp.concatenate([right, zrow], axis=0)
    else:
        left_halo, right_halo = zrow, zrow

    cost = pl.CostEstimate(
        flops=2 * Bp * S * 3 * H * H + 2 * Bp * H * NCP,
        transcendentals=0,
        bytes_accessed=(xb.size + left_halo.size + right_halo.size + wconv_b.size) * 2
                       + (bconv_f.size + wfc_p.size + bfc_p.size + Bp * NCP) * 4,
    )

    def _call(single_buffer_weights):
        res_kw = {}
        if single_buffer_weights and hasattr(pl, "Buffered"):
            # Grid-invariant operands: single-buffer them to halve resident-weight VMEM.
            res_kw = dict(pipeline_mode=pl.Buffered(1))
        in_specs = [
            pl.BlockSpec((tb, ts, H), lambda b, s: (b, s, 0)),           # x (streamed)
            pl.BlockSpec((1, tb, H), lambda b, s: (s, b, 0)),            # left halo row
            pl.BlockSpec((1, tb, H), lambda b, s: (s, b, 0)),            # right halo row
            pl.BlockSpec((3, H, H), lambda b, s: (0, 0, 0), **res_kw),   # conv W
            pl.BlockSpec((1, H), lambda b, s: (0, 0), **res_kw),         # conv bias
            pl.BlockSpec((H, NCP), lambda b, s: (0, 0), **res_kw),       # fc W
            pl.BlockSpec((1, NCP), lambda b, s: (0, 0), **res_kw),       # fc bias
        ]
        return pl.pallas_call(
            _rcnn_kernel,
            out_shape=jax.ShapeDtypeStruct((Bp, NCP), jnp.float32),
            grid_spec=pltpu.PrefetchScalarGridSpec(
                num_scalar_prefetch=0,
                grid=(n_b, n_s),
                in_specs=in_specs,
                out_specs=pl.BlockSpec((tb, NCP), lambda b, s: (b, 0)),
                scratch_shapes=[pltpu.VMEM((tb, H), jnp.float32)],       # running max
            ),
            compiler_params=pltpu.CompilerParams(
                dimension_semantics=("parallel", "arbitrary"),
                vmem_limit_bytes=vmem_limit,
            ),
            cost_estimate=cost,
        )(xb, left_halo, right_halo, wconv_b, bconv_f, wfc_p, bfc_p)

    try:
        out = _call(True)
    except Exception:
        # pipeline_mode / Buffered(1) not supported in this jax build: use defaults.
        out = _call(False)
    return out[:B, :NC]


def rcnn_reference(hidden_states, wconv, bconv, wfc, bfc):
    # Pure-JAX f32 reference of the same math (channels-last conv1d k=3 pad=1).
    B, S, H = hidden_states.shape
    zero_row = jnp.zeros((B, 1, H), dtype=hidden_states.dtype)
    x_prev = jnp.concatenate([zero_row, hidden_states[:, : S - 1, :]], axis=1)
    x_next = jnp.concatenate([hidden_states[:, 1:, :], zero_row], axis=1)
    conv = (
        jnp.einsum("bsh,hc->bsc", x_prev, wconv[0])
        + jnp.einsum("bsh,hc->bsc", hidden_states, wconv[1])
        + jnp.einsum("bsh,hc->bsc", x_next, wconv[2])
        + bconv[0]
    )
    conv = jnp.maximum(conv, 0.0)
    pooled = jnp.max(conv, axis=1)
    return pooled @ wfc + bfc[0]


def _make_params(key, H, NC):
    k_wc, k_bc, k_wf, k_bf = jax.random.split(key, 4)
    conv_bound = 1.0 / jnp.sqrt(jnp.float32(H * 3))
    wconv = jax.random.uniform(k_wc, (3, H, H), jnp.float32, -conv_bound, conv_bound)
    bconv = jax.random.uniform(k_bc, (1, H), jnp.float32, -conv_bound, conv_bound)
    fc_bound = 1.0 / jnp.sqrt(jnp.float32(H))
    wfc = jax.random.uniform(k_wf, (H, NC), jnp.float32, -fc_bound, fc_bound)
    bfc = jax.random.uniform(k_bf, (1, NC), jnp.float32, -fc_bound, fc_bound)
    return wconv, bconv, wfc, bfc


if __name__ == "__main__":
    key = jax.random.PRNGKey(0)
    k_x1, k_p1, k_x2, k_p2 = jax.random.split(key, 4)

    # Test 1: small shapes consistent with the module (batch=2, seq=8, hidden=128, NC=3).
    B, S, H, NC = 2, 8, 128, 3
    x = jax.random.normal(k_x1, (B, S, H), dtype=jnp.float32)
    wconv, bconv, wfc, bfc = _make_params(k_p1, H, NC)
    out = jax.block_until_ready(rcnn_forward(x, wconv, bconv, wfc, bfc))
    ref = rcnn_reference(x, wconv, bconv, wfc, bfc)
    assert out.shape == (B, NC)
    assert jnp.allclose(out, ref, atol=3e-2, rtol=3e-2), "mismatch vs reference (test 1)"

    # Test 2: exercise the sequence grid + halos + roll/patch + running-max (4 S-tiles).
    B2, S2 = 2, 32
    x2 = jax.random.normal(k_x2, (B2, S2, H), dtype=jnp.float32)
    wconv2, bconv2, wfc2, bfc2 = _make_params(k_p2, H, NC)
    out2 = jax.block_until_ready(rcnn_forward(x2, wconv2, bconv2, wfc2, bfc2, ts=8))
    ref2 = rcnn_reference(x2, wconv2, bconv2, wfc2, bfc2)
    assert out2.shape == (B2, NC)
    assert jnp.allclose(out2, ref2, atol=3e-2, rtol=3e-2), "mismatch vs reference (test 2)"

    print("KERNEL_OK")
</pallas_src>

<mosaic_0001>
module attributes {stable_mosaic.version = 11 : i64} {
  func.func @_rcnn_kernel(%arg0: i32, %arg1: i32, %arg2: memref<2x8x128xbf16, #tpu.memory_space<vmem>>, %arg3: memref<1x2x128xbf16, #tpu.memory_space<vmem>>, %arg4: memref<1x2x128xbf16, #tpu.memory_space<vmem>>, %arg5: memref<3x128x128xbf16, #tpu.memory_space<vmem>>, %arg6: memref<1x128xf32, #tpu.memory_space<vmem>>, %arg7: memref<128x128xf32, #tpu.memory_space<vmem>>, %arg8: memref<1x128xf32, #tpu.memory_space<vmem>>, %arg9: memref<2x128xf32, #tpu.memory_space<vmem>>, %arg10: memref<2x128xf32, #tpu.memory_space<vmem>>) attributes {dimension_semantics = [#tpu.dimension_semantics<parallel>, #tpu.dimension_semantics<arbitrary>], iteration_bounds = array<i64: 1, 1>, scalar_prefetch = 0 : i64, scratch_operands = 1 : i64, tpu.core_type = #tpu.core_type<tc>, window_params = [{transform_indices = @transform_0, window_bounds = array<i64: 2, 8, 128>}, {transform_indices = @transform_1, window_bounds = array<i64: 1, 2, 128>}, {transform_indices = @transform_2, window_bounds = array<i64: 1, 2, 128>}, {pipeline_mode = #tpu.pipeline_mode<synchronous>, transform_indices = @transform_3, window_bounds = array<i64: 3, 128, 128>}, {pipeline_mode = #tpu.pipeline_mode<synchronous>, transform_indices = @transform_4, window_bounds = array<i64: 1, 128>}, {pipeline_mode = #tpu.pipeline_mode<synchronous>, transform_indices = @transform_5, window_bounds = array<i64: 128, 128>}, {pipeline_mode = #tpu.pipeline_mode<synchronous>, transform_indices = @transform_6, window_bounds = array<i64: 1, 128>}, {transform_indices = @transform_7, window_bounds = array<i64: 2, 128>}]} {
    %c0_i32 = arith.constant 0 : i32
    %0 = arith.cmpi eq, %arg1, %c0_i32 : i32
    %1 = arith.extui %0 : i1 to i32
    %c0_i32_0 = arith.constant 0 : i32
    %2 = arith.cmpi ne, %1, %c0_i32_0 : i32
    scf.if %2 {
      %cst_34 = arith.constant 0xFF800000 : f32
      %55 = vector.broadcast %cst_34 : f32 to vector<2x128xf32>
      %c0_35 = arith.constant 0 : index
      %c0_36 = arith.constant 0 : index
      %56 = vector.load %arg10[%c0_35, %c0_36] : memref<2x128xf32, #tpu.memory_space<vmem>>, vector<2x128xf32>
      tpu.vector_store %arg10[%c0_35, %c0_36], %55 {strides = array<i32>} : memref<2x128xf32, #tpu.memory_space<vmem>>, vector<2x128xf32>,
    } else {
    }
    %c0 = arith.constant 0 : index
    %c0_1 = arith.constant 0 : index
    %c0_2 = arith.constant 0 : index
    %3 = vector.load %arg2[%c0, %c0_1, %c0_2] : memref<2x8x128xbf16, #tpu.memory_space<vmem>>, vector<2x8x128xbf16>
    %4 = vector.shape_cast %3 : vector<2x8x128xbf16> to vector<16x128xbf16>
    %c1 = arith.constant 1 : index
    %c0_3 = arith.constant 0 : index
    %c0_4 = arith.constant 0 : index
    %5 = vector.load %arg5[%c1, %c0_3, %c0_4] : memref<3x128x128xbf16, #tpu.memory_space<vmem>>, vector<1x128x128xbf16>
    %6 = vector.shape_cast %5 : vector<1x128x128xbf16> to vector<128x128xbf16>
    %cst = arith.constant dense<0.000000e+00> : vector<16x128xf32>
    %7 = tpu.matmul %4, %6, %cst {dimension_numbers = #tpu.dot_dimension_numbers<[1], [0], [0], [1], [0, 0, 1, 1], [], []>} : vector<16x128xbf16>, vector<128x128xbf16>, vector<16x128xf32> -> vector<16x128xf32>
    %8 = vector.shape_cast %7 : vector<16x128xf32> to vector<2x8x128xf32>
    %9 = tpu.iota {dimensions = array<i32: 1>} : vector<1x8x1xi32>
    %c0_5 = arith.constant 0 : index
    %c0_6 = arith.constant 0 : index
    %c0_7 = arith.constant 0 : index
    %10 = vector.load %arg5[%c0_5, %c0_6, %c0_7] : memref<3x128x128xbf16, #tpu.memory_space<vmem>>, vector<1x128x128xbf16>
    %11 = vector.shape_cast %10 : vector<1x128x128xbf16> to vector<128x128xbf16>
    %cst_8 = arith.constant dense<0.000000e+00> : vector<16x128xf32>
    %12 = tpu.matmul %4, %11, %cst_8 {dimension_numbers = #tpu.dot_dimension_numbers<[1], [0], [0], [1], [0, 0, 1, 1], [], []>} : vector<16x128xbf16>, vector<128x128xbf16>, vector<16x128xf32> -> vector<16x128xf32>
    %c1_i32 = arith.constant 1 : i32
    %13 = tpu.dynamic_rotate %12 by %c1_i32 dim 0 : vector<16x128xf32>, i32 -> vector<16x128xf32>
    %14 = vector.shape_cast %13 : vector<16x128xf32> to vector<2x8x128xf32>
    %c0_9 = arith.constant 0 : index
    %c0_10 = arith.constant 0 : index
    %c0_11 = arith.constant 0 : index
    %15 = vector.load %arg3[%c0_9, %c0_10, %c0_11] : memref<1x2x128xbf16, #tpu.memory_space<vmem>>, vector<1x2x128xbf16>
    %16 = vector.shape_cast %15 : vector<1x2x128xbf16> to vector<2x128xbf16>
    %c0_12 = arith.constant 0 : index
    %c0_13 = arith.constant 0 : index
    %c0_14 = arith.constant 0 : index
    %17 = vector.load %arg5[%c0_12, %c0_13, %c0_14] : memref<3x128x128xbf16, #tpu.memory_space<vmem>>, vector<1x128x128xbf16>
    %18 = vector.shape_cast %17 : vector<1x128x128xbf16> to vector<128x128xbf16>
    %cst_15 = arith.constant dense<0.000000e+00> : vector<2x128xf32>
    %19 = tpu.matmul %16, %18, %cst_15 {dimension_numbers = #tpu.dot_dimension_numbers<[1], [0], [0], [1], [0, 0, 1, 1], [], []>} : vector<2x128xbf16>, vector<128x128xbf16>, vector<2x128xf32> -> vector<2x128xf32>
    %c0_i32_16 = arith.constant 0 : i32
    %20 = vector.broadcast %c0_i32_16 : i32 to vector<1x8x1xi32>
    %21 = arith.cmpi eq, %9, %20 : vector<1x8x1xi32>
    %22 = vector.shape_cast %19 : vector<2x128xf32> to vector<2x1x128xf32>
    %23 = vector.shape_cast %21 : vector<1x8x1xi1> to vector<1x8x1xi1>
    %24 = vector.broadcast %23 : vector<1x8x1xi1> to vector<2x8x128xi1>
    %25 = vector.shape_cast %22 : vector<2x1x128xf32> to vector<2x1x128xf32>
    %26 = vector.broadcast %25 : vector<2x1x128xf32> to vector<2x8x128xf32>
    %27 = arith.select %24, %26, %14 : vector<2x8x128xi1>, vector<2x8x128xf32>
    %28 = arith.addf %8, %27 : vector<2x8x128xf32>
    %c2 = arith.constant 2 : index
    %c0_17 = arith.constant 0 : index
    %c0_18 = arith.constant 0 : index
    %29 = vector.load %arg5[%c2, %c0_17, %c0_18] : memref<3x128x128xbf16, #tpu.memory_space<vmem>>, vector<1x128x128xbf16>
    %30 = vector.shape_cast %29 : vector<1x128x128xbf16> to vector<128x128xbf16>
    %cst_19 = arith.constant dense<0.000000e+00> : vector<16x128xf32>
    %31 = tpu.matmul %4, %30, %cst_19 {dimension_numbers = #tpu.dot_dimension_numbers<[1], [0], [0], [1], [0, 0, 1, 1], [], []>} : vector<16x128xbf16>, vector<128x128xbf16>, vector<16x128xf32> -> vector<16x128xf32>
    %c15_i32 = arith.constant 15 : i32
    %32 = tpu.dynamic_rotate %31 by %c15_i32 dim 0 : vector<16x128xf32>, i32 -> vector<16x128xf32>
    %33 = vector.shape_cast %32 : vector<16x128xf32> to vector<2x8x128xf32>
    %c0_20 = arith.constant 0 : index
    %c0_21 = arith.constant 0 : index
    %c0_22 = arith.constant 0 : index
    %34 = vector.load %arg4[%c0_20, %c0_21, %c0_22] : memref<1x2x128xbf16, #tpu.memory_space<vmem>>, vector<1x2x128xbf16>
    %35 = vector.shape_cast %34 : vector<1x2x128xbf16> to vector<2x128xbf16>
    %c2_23 = arith.constant 2 : index
    %c0_24 = arith.constant 0 : index
    %c0_25 = arith.constant 0 : index
    %36 = vector.load %arg5[%c2_23, %c0_24, %c0_25] : memref<3x128x128xbf16, #tpu.memory_space<vmem>>, vector<1x128x128xbf16>
    %37 = vector.shape_cast %36 : vector<1x128x128xbf16> to vector<128x128xbf16>
    %cst_26 = arith.constant dense<0.000000e+00> : vector<2x128xf32>
    %38 = tpu.matmul %35, %37, %cst_26 {dimension_numbers = #tpu.dot_dimension_numbers<[1], [0], [0], [1], [0, 0, 1, 1], [], []>} : vector<2x128xbf16>, vector<128x128xbf16>, vector<2x128xf32> -> vector<2x128xf32>
    %c7_i32 = arith.constant 7 : i32
    %39 = vector.broadcast %c7_i32 : i32 to vector<1x8x1xi32>
    %40 = arith.cmpi eq, %9, %39 : vector<1x8x1xi32>
    %41 = vector.shape_cast %38 : vector<2x128xf32> to vector<2x1x128xf32>
    %42 = vector.shape_cast %40 : vector<1x8x1xi1> to vector<1x8x1xi1>
    %43 = vector.broadcast %42 : vector<1x8x1xi1> to vector<2x8x128xi1>
    %44 = vector.shape_cast %41 : vector<2x1x128xf32> to vector<2x1x128xf32>
    %45 = vector.broadcast %44 : vector<2x1x128xf32> to vector<2x8x128xf32>
    %46 = arith.select %43, %45, %33 : vector<2x8x128xi1>, vector<2x8x128xf32>
    %47 = arith.addf %28, %46 : vector<2x8x128xf32>
    %c0_27 = arith.constant 0 : index
    %c0_28 = arith.constant 0 : index
    %48 = vector.load %arg10[%c0_27, %c0_28] : memref<2x128xf32, #tpu.memory_space<vmem>>, vector<2x128xf32>
    %cst_29 = arith.constant dense<0xFF800000> : vector<2x128xf32>
    %49 = vector.multi_reduction <maximumf>, %47, %cst_29 [1] : vector<2x8x128xf32> to vector<2x128xf32>
    %50 = arith.maximumf %48, %49 : vector<2x128xf32>
    %c0_30 = arith.constant 0 : index
    %c0_31 = arith.constant 0 : index
    %51 = vector.load %arg10[%c0_30, %c0_31] : memref<2x128xf32, #tpu.memory_space<vmem>>, vector<2x128xf32>
    tpu.vector_store %arg10[%c0_30, %c0_31], %50 {strides = array<i32>} : memref<2x128xf32, #tpu.memory_space<vmem>>, vector<2x128xf32>,
    %c0_i32_32 = arith.constant 0 : i32
    %52 = arith.cmpi eq, %arg1, %c0_i32_32 : i32
    %53 = arith.extui %52 : i1 to i32
    %c0_i32_33 = arith.constant 0 : i32
    %54 = arith.cmpi ne, %53, %c0_i32_33 : i32
    scf.if %54 {
      %c0_34 = arith.constant 0 : index
      %c0_35 = arith.constant 0 : index
      %55 = vector.load %arg10[%c0_34, %c0_35] : memref<2x128xf32, #tpu.memory_space<vmem>>, vector<2x128xf32>
      %c0_36 = arith.constant 0 : index
      %c0_37 = arith.constant 0 : index
      %56 = vector.load %arg6[%c0_36, %c0_37] : memref<1x128xf32, #tpu.memory_space<vmem>>, vector<1x128xf32>
      %57 = vector.broadcast %56 : vector<1x128xf32> to vector<2x128xf32>
      %58 = arith.addf %55, %57 : vector<2x128xf32>
      %cst_38 = arith.constant 0.000000e+00 : f32
      %59 = vector.broadcast %cst_38 : f32 to vector<2x128xf32>
      %60 = arith.maximumf %58, %59 : vector<2x128xf32>
      %c0_39 = arith.constant 0 : index
      %c0_40 = arith.constant 0 : index
      %61 = vector.load %arg7[%c0_39, %c0_40] : memref<128x128xf32, #tpu.memory_space<vmem>>, vector<128x128xf32>
      %cst_41 = arith.constant dense<0.000000e+00> : vector<2x128xf32>
      %62 = tpu.matmul %60, %61, %cst_41 {dimension_numbers = #tpu.dot_dimension_numbers<[1], [0], [0], [1], [0, 0, 1, 1], [], []>} : vector<2x128xf32>, vector<128x128xf32>, vector<2x128xf32> -> vector<2x128xf32>
      %c0_42 = arith.constant 0 : index
      %c0_43 = arith.constant 0 : index
      %63 = vector.load %arg8[%c0_42, %c0_43] : memref<1x128xf32, #tpu.memory_space<vmem>>, vector<1x128xf32>
      %64 = vector.broadcast %63 : vector<1x128xf32> to vector<2x128xf32>
      %65 = arith.addf %62, %64 : vector<2x128xf32>
      %c0_44 = arith.constant 0 : index
      %c0_45 = arith.constant 0 : index
      %66 = vector.load %arg9[%c0_44, %c0_45] : memref<2x128xf32, #tpu.memory_space<vmem>>, vector<2x128xf32>
      tpu.vector_store %arg9[%c0_44, %c0_45], %65 {strides = array<i32>} : memref<2x128xf32, #tpu.memory_space<vmem>>, vector<2x128xf32>,
    } else {
    }
    return
  }
  func.func @transform_0(%arg0: i32, %arg1: i32) -> (i32, i32, i32) {
    %c0_i32 = arith.constant 0 : i32
    %c0_i32_0 = arith.constant 0 : i32
    return %arg0, %arg1, %c0_i32 : i32, i32, i32
  }
  func.func @transform_1(%arg0: i32, %arg1: i32) -> (i32, i32, i32) {
    %c0_i32 = arith.constant 0 : i32
    %c0_i32_0 = arith.constant 0 : i32
    return %arg1, %arg0, %c0_i32 : i32, i32, i32
  }
  func.func @transform_2(%arg0: i32, %arg1: i32) -> (i32, i32, i32) {
    %c0_i32 = arith.constant 0 : i32
    %c0_i32_0 = arith.constant 0 : i32
    return %arg1, %arg0, %c0_i32 : i32, i32, i32
  }
  func.func @transform_3(%arg0: i32, %arg1: i32) -> (i32, i32, i32) {
    %c0_i32 = arith.constant 0 : i32
    %c0_i32_0 = arith.constant 0 : i32
    %c0_i32_1 = arith.constant 0 : i32
    %c0_i32_2 = arith.constant 0 : i32
    return %c0_i32, %c0_i32_0, %c0_i32_1 : i32, i32, i32
  }
  func.func @transform_4(%arg0: i32, %arg1: i32) -> (i32, i32) {
    %c0_i32 = arith.constant 0 : i32
    %c0_i32_0 = arith.constant 0 : i32
    %c0_i32_1 = arith.constant 0 : i32
    return %c0_i32, %c0_i32_0 : i32, i32
  }
  func.func @transform_5(%arg0: i32, %arg1: i32) -> (i32, i32) {
    %c0_i32 = arith.constant 0 : i32
    %c0_i32_0 = arith.constant 0 : i32
    %c0_i32_1 = arith.constant 0 : i32
    return %c0_i32, %c0_i32_0 : i32, i32
  }
  func.func @transform_6(%arg0: i32, %arg1: i32) -> (i32, i32) {
    %c0_i32 = arith.constant 0 : i32
    %c0_i32_0 = arith.constant 0 : i32
    %c0_i32_1 = arith.constant 0 : i32
    return %c0_i32, %c0_i32_0 : i32, i32
  }
  func.func @transform_7(%arg0: i32, %arg1: i32) -> (i32, i32) {
    %c0_i32 = arith.constant 0 : i32
    %c0_i32_0 = arith.constant 0 : i32
    return %arg0, %c0_i32 : i32, i32
  }
}

module attributes {stable_mosaic.version = 11 : i64} {
  func.func @_rcnn_kernel(%arg0: i32, %arg1: i32, %arg2: memref<2x8x128xbf16, #tpu.memory_space<vmem>>, %arg3: memref<1x2x128xbf16, #tpu.memory_space<vmem>>, %arg4: memref<1x2x128xbf16, #tpu.memory_space<vmem>>, %arg5: memref<3x128x128xbf16, #tpu.memory_space<vmem>>, %arg6: memref<1x128xf32, #tpu.memory_space<vmem>>, %arg7: memref<128x128xf32, #tpu.memory_space<vmem>>, %arg8: memref<1x128xf32, #tpu.memory_space<vmem>>, %arg9: memref<2x128xf32, #tpu.memory_space<vmem>>, %arg10: memref<2x128xf32, #tpu.memory_space<vmem>>) attributes {dimension_semantics = [#tpu.dimension_semantics<parallel>, #tpu.dimension_semantics<arbitrary>], iteration_bounds = array<i64: 1, 1>, scalar_prefetch = 0 : i64, scratch_operands = 1 : i64, tpu.core_type = #tpu.core_type<tc>, window_params = [{transform_indices = @transform_0, window_bounds = array<i64: 2, 8, 128>}, {transform_indices = @transform_1, window_bounds = array<i64: 1, 2, 128>}, {transform_indices = @transform_2, window_bounds = array<i64: 1, 2, 128>}, {pipeline_mode = #tpu.pipeline_mode<synchronous>, transform_indices = @transform_3, window_bounds = array<i64: 3, 128, 128>}, {pipeline_mode = #tpu.pipeline_mode<synchronous>, transform_indices = @transform_4, window_bounds = array<i64: 1, 128>}, {pipeline_mode = #tpu.pipeline_mode<synchronous>, transform_indices = @transform_5, window_bounds = array<i64: 128, 128>}, {pipeline_mode = #tpu.pipeline_mode<synchronous>, transform_indices = @transform_6, window_bounds = array<i64: 1, 128>}, {transform_indices = @transform_7, window_bounds = array<i64: 2, 128>}]} {
    %c0_i32 = arith.constant 0 : i32
    %0 = arith.cmpi eq, %arg1, %c0_i32 : i32
    %1 = arith.extui %0 : i1 to i32
    %c0_i32_0 = arith.constant 0 : i32
    %2 = arith.cmpi ne, %1, %c0_i32_0 : i32
    scf.if %2 {
      %cst_34 = arith.constant 0xFF800000 : f32
      %55 = vector.broadcast %cst_34 : f32 to vector<2x128xf32>
      %c0_35 = arith.constant 0 : index
      %c0_36 = arith.constant 0 : index
      %56 = vector.load %arg10[%c0_35, %c0_36] : memref<2x128xf32, #tpu.memory_space<vmem>>, vector<2x128xf32>
      tpu.vector_store %arg10[%c0_35, %c0_36], %55 {strides = array<i32>} : memref<2x128xf32, #tpu.memory_space<vmem>>, vector<2x128xf32>,
    } else {
    }
    %c0 = arith.constant 0 : index
    %c0_1 = arith.constant 0 : index
    %c0_2 = arith.constant 0 : index
    %3 = vector.load %arg2[%c0, %c0_1, %c0_2] : memref<2x8x128xbf16, #tpu.memory_space<vmem>>, vector<2x8x128xbf16>
    %4 = vector.shape_cast %3 : vector<2x8x128xbf16> to vector<16x128xbf16>
    %c1 = arith.constant 1 : index
    %c0_3 = arith.constant 0 : index
    %c0_4 = arith.constant 0 : index
    %5 = vector.load %arg5[%c1, %c0_3, %c0_4] : memref<3x128x128xbf16, #tpu.memory_space<vmem>>, vector<1x128x128xbf16>
    %6 = vector.shape_cast %5 : vector<1x128x128xbf16> to vector<128x128xbf16>
    %cst = arith.constant dense<0.000000e+00> : vector<16x128xf32>
    %7 = tpu.matmul %4, %6, %cst {dimension_numbers = #tpu.dot_dimension_numbers<[1], [0], [0], [1], [0, 0, 1, 1], [], []>} : vector<16x128xbf16>, vector<128x128xbf16>, vector<16x128xf32> -> vector<16x128xf32>
    %8 = vector.shape_cast %7 : vector<16x128xf32> to vector<2x8x128xf32>
    %9 = tpu.iota {dimensions = array<i32: 1>} : vector<1x8x1xi32>
    %c0_5 = arith.constant 0 : index
    %c0_6 = arith.constant 0 : index
    %c0_7 = arith.constant 0 : index
    %10 = vector.load %arg5[%c0_5, %c0_6, %c0_7] : memref<3x128x128xbf16, #tpu.memory_space<vmem>>, vector<1x128x128xbf16>
    %11 = vector.shape_cast %10 : vector<1x128x128xbf16> to vector<128x128xbf16>
    %cst_8 = arith.constant dense<0.000000e+00> : vector<16x128xf32>
    %12 = tpu.matmul %4, %11, %cst_8 {dimension_numbers = #tpu.dot_dimension_numbers<[1], [0], [0], [1], [0, 0, 1, 1], [], []>} : vector<16x128xbf16>, vector<128x128xbf16>, vector<16x128xf32> -> vector<16x128xf32>
    %c1_i32 = arith.constant 1 : i32
    %13 = tpu.dynamic_rotate %12 by %c1_i32 dim 0 : vector<16x128xf32>, i32 -> vector<16x128xf32>
    %14 = vector.shape_cast %13 : vector<16x128xf32> to vector<2x8x128xf32>
    %c0_9 = arith.constant 0 : index
    %c0_10 = arith.constant 0 : index
    %c0_11 = arith.constant 0 : index
    %15 = vector.load %arg3[%c0_9, %c0_10, %c0_11] : memref<1x2x128xbf16, #tpu.memory_space<vmem>>, vector<1x2x128xbf16>
    %16 = vector.shape_cast %15 : vector<1x2x128xbf16> to vector<2x128xbf16>
    %c0_12 = arith.constant 0 : index
    %c0_13 = arith.constant 0 : index
    %c0_14 = arith.constant 0 : index
    %17 = vector.load %arg5[%c0_12, %c0_13, %c0_14] : memref<3x128x128xbf16, #tpu.memory_space<vmem>>, vector<1x128x128xbf16>
    %18 = vector.shape_cast %17 : vector<1x128x128xbf16> to vector<128x128xbf16>
    %cst_15 = arith.constant dense<0.000000e+00> : vector<2x128xf32>
    %19 = tpu.matmul %16, %18, %cst_15 {dimension_numbers = #tpu.dot_dimension_numbers<[1], [0], [0], [1], [0, 0, 1, 1], [], []>} : vector<2x128xbf16>, vector<128x128xbf16>, vector<2x128xf32> -> vector<2x128xf32>
    %c0_i32_16 = arith.constant 0 : i32
    %20 = vector.broadcast %c0_i32_16 : i32 to vector<1x8x1xi32>
    %21 = arith.cmpi eq, %9, %20 : vector<1x8x1xi32>
    %22 = vector.shape_cast %19 : vector<2x128xf32> to vector<2x1x128xf32>
    %23 = vector.shape_cast %21 : vector<1x8x1xi1> to vector<1x8x1xi1>
    %24 = vector.broadcast %23 : vector<1x8x1xi1> to vector<2x8x128xi1>
    %25 = vector.shape_cast %22 : vector<2x1x128xf32> to vector<2x1x128xf32>
    %26 = vector.broadcast %25 : vector<2x1x128xf32> to vector<2x8x128xf32>
    %27 = arith.select %24, %26, %14 : vector<2x8x128xi1>, vector<2x8x128xf32>
    %28 = arith.addf %8, %27 : vector<2x8x128xf32>
    %c2 = arith.constant 2 : index
    %c0_17 = arith.constant 0 : index
    %c0_18 = arith.constant 0 : index
    %29 = vector.load %arg5[%c2, %c0_17, %c0_18] : memref<3x128x128xbf16, #tpu.memory_space<vmem>>, vector<1x128x128xbf16>
    %30 = vector.shape_cast %29 : vector<1x128x128xbf16> to vector<128x128xbf16>
    %cst_19 = arith.constant dense<0.000000e+00> : vector<16x128xf32>
    %31 = tpu.matmul %4, %30, %cst_19 {dimension_numbers = #tpu.dot_dimension_numbers<[1], [0], [0], [1], [0, 0, 1, 1], [], []>} : vector<16x128xbf16>, vector<128x128xbf16>, vector<16x128xf32> -> vector<16x128xf32>
    %c15_i32 = arith.constant 15 : i32
    %32 = tpu.dynamic_rotate %31 by %c15_i32 dim 0 : vector<16x128xf32>, i32 -> vector<16x128xf32>
    %33 = vector.shape_cast %32 : vector<16x128xf32> to vector<2x8x128xf32>
    %c0_20 = arith.constant 0 : index
    %c0_21 = arith.constant 0 : index
    %c0_22 = arith.constant 0 : index
    %34 = vector.load %arg4[%c0_20, %c0_21, %c0_22] : memref<1x2x128xbf16, #tpu.memory_space<vmem>>, vector<1x2x128xbf16>
    %35 = vector.shape_cast %34 : vector<1x2x128xbf16> to vector<2x128xbf16>
    %c2_23 = arith.constant 2 : index
    %c0_24 = arith.constant 0 : index
    %c0_25 = arith.constant 0 : index
    %36 = vector.load %arg5[%c2_23, %c0_24, %c0_25] : memref<3x128x128xbf16, #tpu.memory_space<vmem>>, vector<1x128x128xbf16>
    %37 = vector.shape_cast %36 : vector<1x128x128xbf16> to vector<128x128xbf16>
    %cst_26 = arith.constant dense<0.000000e+00> : vector<2x128xf32>
    %38 = tpu.matmul %35, %37, %cst_26 {dimension_numbers = #tpu.dot_dimension_numbers<[1], [0], [0], [1], [0, 0, 1, 1], [], []>} : vector<2x128xbf16>, vector<128x128xbf16>, vector<2x128xf32> -> vector<2x128xf32>
    %c7_i32 = arith.constant 7 : i32
    %39 = vector.broadcast %c7_i32 : i32 to vector<1x8x1xi32>
    %40 = arith.cmpi eq, %9, %39 : vector<1x8x1xi32>
    %41 = vector.shape_cast %38 : vector<2x128xf32> to vector<2x1x128xf32>
    %42 = vector.shape_cast %40 : vector<1x8x1xi1> to vector<1x8x1xi1>
    %43 = vector.broadcast %42 : vector<1x8x1xi1> to vector<2x8x128xi1>
    %44 = vector.shape_cast %41 : vector<2x1x128xf32> to vector<2x1x128xf32>
    %45 = vector.broadcast %44 : vector<2x1x128xf32> to vector<2x8x128xf32>
    %46 = arith.select %43, %45, %33 : vector<2x8x128xi1>, vector<2x8x128xf32>
    %47 = arith.addf %28, %46 : vector<2x8x128xf32>
    %c0_27 = arith.constant 0 : index
    %c0_28 = arith.constant 0 : index
    %48 = vector.load %arg10[%c0_27, %c0_28] : memref<2x128xf32, #tpu.memory_space<vmem>>, vector<2x128xf32>
    %cst_29 = arith.constant dense<0xFF800000> : vector<2x128xf32>
    %49 = vector.multi_reduction <maximumf>, %47, %cst_29 [1] : vector<2x8x128xf32> to vector<2x128xf32>
    %50 = arith.maximumf %48, %49 : vector<2x128xf32>
    %c0_30 = arith.constant 0 : index
    %c0_31 = arith.constant 0 : index
    %51 = vector.load %arg10[%c0_30, %c0_31] : memref<2x128xf32, #tpu.memory_space<vmem>>, vector<2x128xf32>
    tpu.vector_store %arg10[%c0_30, %c0_31], %50 {strides = array<i32>} : memref<2x128xf32, #tpu.memory_space<vmem>>, vector<2x128xf32>,
    %c0_i32_32 = arith.constant 0 : i32
    %52 = arith.cmpi eq, %arg1, %c0_i32_32 : i32
    %53 = arith.extui %52 : i1 to i32
    %c0_i32_33 = arith.constant 0 : i32
    %54 = arith.cmpi ne, %53, %c0_i32_33 : i32
    scf.if %54 {
      %c0_34 = arith.constant 0 : index
      %c0_35 = arith.constant 0 : index
      %55 = vector.load %arg10[%c0_34, %c0_35] : memref<2x128xf32, #tpu.memory_space<vmem>>, vector<2x128xf32>
      %c0_36 = arith.constant 0 : index
      %c0_37 = arith.constant 0 : index
      %56 = vector.load %arg6[%c0_36, %c0_37] : memref<1x128xf32, #tpu.memory_space<vmem>>, vector<1x128xf32>
      %57 = vector.broadcast %56 : vector<1x128xf32> to vector<2x128xf32>
      %58 = arith.addf %55, %57 : vector<2x128xf32>
      %cst_38 = arith.constant 0.000000e+00 : f32
      %59 = vector.broadcast %cst_38 : f32 to vector<2x128xf32>
      %60 = arith.maximumf %58, %59 : vector<2x128xf32>
      %c0_39 = arith.constant 0 : index
      %c0_40 = arith.constant 0 : index
      %61 = vector.load %arg7[%c0_39, %c0_40] : memref<128x128xf32, #tpu.memory_space<vmem>>, vector<128x128xf32>
      %cst_41 = arith.constant dense<0.000000e+00> : vector<2x128xf32>
      %62 = tpu.matmul %60, %61, %cst_41 {dimension_numbers = #tpu.dot_dimension_numbers<[1], [0], [0], [1], [0, 0, 1, 1], [], []>} : vector<2x128xf32>, vector<128x128xf32>, vector<2x128xf32> -> vector<2x128xf32>
      %c0_42 = arith.constant 0 : index
      %c0_43 = arith.constant 0 : index
      %63 = vector.load %arg8[%c0_42, %c0_43] : memref<1x128xf32, #tpu.memory_space<vmem>>, vector<1x128xf32>
      %64 = vector.broadcast %63 : vector<1x128xf32> to vector<2x128xf32>
      %65 = arith.addf %62, %64 : vector<2x128xf32>
      %c0_44 = arith.constant 0 : index
      %c0_45 = arith.constant 0 : index
      %66 = vector.load %arg9[%c0_44, %c0_45] : memref<2x128xf32, #tpu.memory_space<vmem>>, vector<2x128xf32>
      tpu.vector_store %arg9[%c0_44, %c0_45], %65 {strides = array<i32>} : memref<2x128xf32, #tpu.memory_space<vmem>>, vector<2x128xf32>,
    } else {
    }
    return
  }
  func.func @transform_0(%arg0: i32, %arg1: i32) -> (i32, i32, i32) {
    %c0_i32 = arith.constant 0 : i32
    %c0_i32_0 = arith.constant 0 : i32
    return %arg0, %arg1, %c0_i32 : i32, i32, i32
  }
  func.func @transform_1(%arg0: i32, %arg1: i32) -> (i32, i32, i32) {
    %c0_i32 = arith.constant 0 : i32
    %c0_i32_0 = arith.constant 0 : i32
    return %arg1, %arg0, %c0_i32 : i32, i32, i32
  }
  func.func @transform_2(%arg0: i32, %arg1: i32) -> (i32, i32, i32) {
    %c0_i32 = arith.constant 0 : i32
    %c0_i32_0 = arith.constant 0 : i32
    return %arg1, %arg0, %c0_i32 : i32, i32, i32
  }
  func.func @transform_3(%arg0: i32, %arg1: i32) -> (i32, i32, i32) {
    %c0_i32 = arith.constant 0 : i32
    %c0_i32_0 = arith.constant 0 : i32
    %c0_i32_1 = arith.constant 0 : i32
    %c0_i32_2 = arith.constant 0 : i32
    return %c0_i32, %c0_i32_0, %c0_i32_1 : i32, i32, i32
  }
  func.func @transform_4(%arg0: i32, %arg1: i32) -> (i32, i32) {
    %c0_i32 = arith.constant 0 : i32
    %c0_i32_0 = arith.constant 0 : i32
    %c0_i32_1 = arith.constant 0 : i32
    return %c0_i32, %c0_i32_0 : i32, i32
  }
  func.func @transform_5(%arg0: i32, %arg1: i32) -> (i32, i32) {
    %c0_i32 = arith.constant 0 : i32
    %c0_i32_0 = arith.constant 0 : i32
    %c0_i32_1 = arith.constant 0 : i32
    return %c0_i32, %c0_i32_0 : i32, i32
  }
  func.func @transform_6(%arg0: i32, %arg1: i32) -> (i32, i32) {
    %c0_i32 = arith.constant 0 : i32
    %c0_i32_0 = arith.constant 0 : i32
    %c0_i32_1 = arith.constant 0 : i32
    return %c0_i32, %c0_i32_0 : i32, i32
  }
  func.func @transform_7(%arg0: i32, %arg1: i32) -> (i32, i32) {
    %c0_i32 = arith.constant 0 : i32
    %c0_i32_0 = arith.constant 0 : i32
    return %arg0, %c0_i32 : i32, i32
  }
}

</mosaic_0001>

<bundles_post_ra>
// kernel: tpu_custom_call.1
= control target key start
LH: loop header
LB: loop body
LE: loop exit
PB: predicated region body
PF: predicated region fallthrough
CT: control target
= control target key end

     0   :  { %12 = vsyncpa [#allocation4], 0  ;;  %s1451_s0 = inlined_call_operand.hbm [shape: bf16[2,8,128], index: 0, kind: input, shape index: {}]   ;;  %s1452_s1 = inlined_call_operand.hbm [shape: bf16[1,2,128], index: 1, kind: input, shape index: {}]   ;;  %s1453_s2 = inlined_call_operand.hbm [shape: bf16[1,2,128], index: 2, kind: input, shape index: {}]   ;;  %s1454_s3 = inlined_call_operand.hbm [shape: bf16[3,128,128], index: 3, kind: input, shape index: {}]   ;;  %s1455_s4 = inlined_call_operand.hbm [shape: f32[1,128], index: 4, kind: input, shape index: {}]   ;;  %s1456_s5 = inlined_call_operand.hbm [shape: f32[128,128], index: 5, kind: input, shape index: {}]   ;;  %s1457_s6 = inlined_call_operand.hbm [shape: f32[1,128], index: 6, kind: input, shape index: {}]   ;;  %s1458_s7 = inlined_call_operand.hbm [shape: f32[2,128], index: 7, kind: output, shape index: {}]  }
   0x1   :  { %13 = vsyncpa [#allocation7], 0 }
   0x2   :  { %14 = vsyncpa [#allocation10], 0 }
   0x3   :  { %15 = vsyncpa [#allocation13], 0 }
   0x4   :  { %16 = vsyncpa [#allocation5], 0  ;;  %s1240_s24 = smov [#allocation6]   ;;  %s1054_s28 = scalar_lea.hbm %s1452_s1, 16 }
   0x5   :  { %s35_s25 = sshll.u32 %s1240_s24, 4  ;;  %p1055_p0 = scmp.ne.s32.totalorder %s1452_s1, %s1054_s28  ;;  %s36_s25 = int_to_ptr.vmem [resolvable:$true] %s35_s25 }
   0x6   :  { %p1058_p1 = scmp.lt.u32.totalorder %s1054_s28, %s1452_s1 }
   0x8   :  { %p1060_p2 = pnand %p1058_p1, %p1055_p0 }
   0xa   :  { %1063 = shalt.err (!%p1060_p2)
}
   0xb   :  { %s1064_s10 = scalar_lea.vmem %s36_s25, 16  ;;  %s1068_s11 = scalar_lea.vmem %s36_s25, 32 }
   0xc   :  { %p1065_p3 = scmp.ne.s32.totalorder %s36_s25, %s1064_s10  ;;  %p1069_p4 = scmp.lt.s32.totalorder %s36_s25, %s36_s25 }
   0xd   :  { %p1070_p5 = scmp.lt.s32.totalorder %s1068_s11, %s1064_s10 }
   0xf   :  { %p1071_p6 = por %p1070_p5, %p1069_p4 }
  0x11   :  { %p1072_p7 = pnand %p1071_p6, %p1065_p3 }
  0x13   :  { %1075 = shalt.err (!%p1072_p7)
}
  0x14   :  { %38 = dma.hbm_to_vmem [thread:$0]  %s1452_s1, 16, %s36_s25, [#allocation7]  }
  0x15   :  { %s1241_s14 = smov [#allocation9]   ;;  %s1242_s16 = smov [#allocation12]  }
  0x16   :  { %s54_s15 = sshll.u32 %s1241_s14, 4  ;;  %s76_s17 = sshll.u32 %s1242_s16, 4  ;;  %s55_s15 = int_to_ptr.vmem [resolvable:$true] %s54_s15  ;;  %s77_s17 = int_to_ptr.vmem [resolvable:$true] %s76_s17 }
  0x17   :  { %s1076_s20 = scalar_lea.hbm %s1454_s3, 3072 }
  0x18   :  { %p1077_p8 = scmp.ne.s32.totalorder %s1454_s3, %s1076_s20  ;;  %p1080_p9 = scmp.lt.u32.totalorder %s1076_s20, %s1454_s3 }
  0x1a   :  { %p1082_p10 = pnand %p1080_p9, %p1077_p8 }
  0x1c   :  { %1085 = shalt.err (!%p1082_p10)
}
  0x1d   :  { %s1086_s1 = scalar_lea.vmem %s55_s15, 3072  ;;  %p1091_p12 = scmp.lt.s32.totalorder %s55_s15, %s55_s15 }
  0x1e   :  { %p1087_p11 = scmp.ne.s32.totalorder %s55_s15, %s1086_s1  ;;  %p1092_p13 = scmp.lt.s32.totalorder %s1086_s1, %s1086_s1 }
  0x20   :  { %p1093_p0 = por %p1092_p13, %p1091_p12 }
  0x22   :  { %p1094_p1 = pnand %p1093_p0, %p1087_p11 }
  0x24   :  { %1097 = shalt.err (!%p1094_p1)
}
  0x25   :  { %s1243_s25 = smov 64   ;;  %s1244_s26 = smov 4  }
  0x26   :  { %60 = dma.hbm_to_vmem [thread:$0]  %s1454_s3, 3072, %s55_s15, [#allocation10], %s1243_s25, %s1243_s25, %s1244_s26  }
  0x27   :  { %s1098_s8 = scalar_lea.hbm %s1456_s5, 2048 }
  0x28   :  { %p1099_p2 = scmp.ne.s32.totalorder %s1456_s5, %s1098_s8  ;;  %p1102_p3 = scmp.lt.u32.totalorder %s1098_s8, %s1456_s5 }
  0x2a   :  { %p1104_p4 = pnand %p1102_p3, %p1099_p2 }
  0x2c   :  { %1107 = shalt.err (!%p1104_p4)
}
  0x2d   :  { %s1108_s13 = scalar_lea.vmem %s77_s17, 2048  ;;  %p1113_p6 = scmp.lt.s32.totalorder %s77_s17, %s77_s17 }
  0x2e   :  { %p1109_p5 = scmp.ne.s32.totalorder %s77_s17, %s1108_s13  ;;  %p1114_p7 = scmp.lt.s32.totalorder %s1108_s13, %s1108_s13 }
  0x30   :  { %p1115_p8 = por %p1114_p7, %p1113_p6 }
  0x32   :  { %p1116_p9 = pnand %p1115_p8, %p1109_p5 }
  0x34   :  { %1119 = shalt.err (!%p1116_p9)
}
  0x35   :  { %s1245_s3 = smov 128   ;;  %s1246_s14 = smov 8  }
  0x36   :  { %82 = dma.hbm_to_vmem [thread:$0]  %s1456_s5, 2048, %s77_s17, [#allocation13], %s1245_s3, %s1245_s3, %s1246_s14  }
  0x37   :  { %s1247_s18 = smov [#allocation3]   ;;  %s1248_s20 = smov [#allocation8]  }
  0x38   :  { %s22_s19 = sshll.u32 %s1247_s18, 4  ;;  %s45_s21 = sshll.u32 %s1248_s20, 4  ;;  %s23_s19 = int_to_ptr.vmem [resolvable:$true] %s22_s19  ;;  %s46_s21 = int_to_ptr.vmem [resolvable:$true] %s45_s21 }
  0x39   :  { %s1120_s24 = scalar_lea.hbm %s1451_s0, 128 }
  0x3a   :  { %p1121_p10 = scmp.ne.s32.totalorder %s1451_s0, %s1120_s24  ;;  %p1124_p11 = scmp.lt.u32.totalorder %s1120_s24, %s1451_s0 }
  0x3c   :  { %p1126_p12 = pnand %p1124_p11, %p1121_p10 }
  0x3e   :  { %1129 = shalt.err (!%p1126_p12)
}
  0x3f   :  { %s1130_s5 = scalar_lea.vmem %s23_s19, 128  ;;  %p1135_p0 = scmp.lt.s32.totalorder %s23_s19, %s23_s19 }
  0x40   :  { %p1131_p13 = scmp.ne.s32.totalorder %s23_s19, %s1130_s5  ;;  %p1136_p1 = scmp.lt.s32.totalorder %s1130_s5, %s1130_s5 }
  0x42   :  { %p1137_p2 = por %p1136_p1, %p1135_p0 }
  0x44   :  { %p1138_p3 = pnand %p1137_p2, %p1131_p13 }
  0x46   :  { %1141 = shalt.err (!%p1138_p3)
}
  0x47   :  { %28 = dma.hbm_to_vmem [thread:$0]  %s1451_s0, 128, %s23_s19, [#allocation4], %s1243_s25, %s1243_s25, %s1244_s26  }
  0x48   :  { %s1142_s10 = scalar_lea.hbm %s1453_s2, 16 }
  0x49   :  { %p1143_p4 = scmp.ne.s32.totalorder %s1453_s2, %s1142_s10  ;;  %p1146_p5 = scmp.lt.u32.totalorder %s1142_s10, %s1453_s2 }
  0x4b   :  { %p1148_p6 = pnand %p1146_p5, %p1143_p4 }
  0x4d   :  { %1151 = shalt.err (!%p1148_p6)
}
  0x4e   :  { %s1152_s14 = scalar_lea.vmem %s46_s21, 16  ;;  %s1156_s15 = scalar_lea.vmem %s46_s21, 32 }
  0x4f   :  { %p1153_p7 = scmp.ne.s32.totalorder %s46_s21, %s1152_s14  ;;  %p1157_p8 = scmp.lt.s32.totalorder %s46_s21, %s46_s21 }
  0x50   :  { %p1158_p9 = scmp.lt.s32.totalorder %s1156_s15, %s1152_s14 }
  0x52   :  { %p1159_p10 = por %p1158_p9, %p1157_p8 }
  0x54   :  { %p1160_p11 = pnand %p1159_p10, %p1153_p7 }
  0x56   :  { %1163 = shalt.err (!%p1160_p11)
}
  0x57   :  { %48 = dma.hbm_to_vmem [thread:$0]  %s1453_s2, 16, %s46_s21, [#allocation7]  }
  0x58   :  { %s1249_s26 = smov [#allocation11]   ;;  %s1250_s18 = smov [#allocation14]  }
  0x59   :  { %s67_s16 = sshll.u32 %s1249_s26, 4  ;;  %s89_s19 = sshll.u32 %s1250_s18, 4  ;;  %s68_s16 = int_to_ptr.vmem [resolvable:$true] %s67_s16  ;;  %s90_s19 = int_to_ptr.vmem [resolvable:$true] %s89_s19 }
  0x5a   :  { %s1164_s23 = scalar_lea.hbm %s1455_s4, 16 }
  0x5b   :  { %p1165_p12 = scmp.ne.s32.totalorder %s1455_s4, %s1164_s23  ;;  %p1168_p13 = scmp.lt.u32.totalorder %s1164_s23, %s1455_s4 }
  0x5d   :  { %p1170_p0 = pnand %p1168_p13, %p1165_p12 }
  0x5f   :  { %1173 = shalt.err (!%p1170_p0)
}
  0x60   :  { %s1174_s2 = scalar_lea.vmem %s68_s16, 16  ;;  %s1178_s21 = scalar_lea.vmem %s68_s16, 32 }
  0x61   :  { %p1175_p1 = scmp.ne.s32.totalorder %s68_s16, %s1174_s2  ;;  %p1179_p2 = scmp.lt.s32.totalorder %s68_s16, %s68_s16 }
  0x62   :  { %p1180_p3 = scmp.lt.s32.totalorder %s1178_s21, %s1174_s2 }
  0x64   :  { %p1181_p4 = por %p1180_p3, %p1179_p2 }
  0x66   :  { %p1182_p5 = pnand %p1181_p4, %p1175_p1 }
  0x68   :  { %1185 = shalt.err (!%p1182_p5)
}
  0x69   :  { %70 = dma.hbm_to_vmem [thread:$0]  %s1455_s4, 16, %s68_s16, [#allocation10]  }
  0x6a   :  { %s1186_s8 = scalar_lea.hbm %s1457_s6, 16 }
  0x6b   :  { %p1187_p6 = scmp.ne.s32.totalorder %s1457_s6, %s1186_s8  ;;  %p1190_p7 = scmp.lt.u32.totalorder %s1186_s8, %s1457_s6 }
  0x6d   :  { %p1192_p8 = pnand %p1190_p7, %p1187_p6 }
  0x6f   :  { %1195 = shalt.err (!%p1192_p8)
}
  0x70   :  { %s1196_s13 = scalar_lea.vmem %s90_s19, 16  ;;  %s1200_s3 = scalar_lea.vmem %s90_s19, 32 }
  0x71   :  { %p1197_p9 = scmp.ne.s32.totalorder %s90_s19, %s1196_s13  ;;  %p1201_p10 = scmp.lt.s32.totalorder %s90_s19, %s90_s19 }
  0x72   :  { %p1202_p11 = scmp.lt.s32.totalorder %s1200_s3, %s1196_s13 }
  0x74   :  { %p1203_p12 = por %p1202_p11, %p1201_p10 }
  0x76   :  { %p1204_p13 = pnand %p1203_p12, %p1197_p9 }
  0x78   :  { %1207 = shalt.err (!%p1204_p13)
}
  0x79   :  { %92 = dma.hbm_to_vmem [thread:$0]  %s1457_s6, 16, %s90_s19, [#allocation13]  }
  0x7a   :  { %1230 = dma.done.wait [#allocation4], 128  }
  0x7b   :  { %1231 = vsyncadd [#allocation4], 4294967168 }
  0x7c   :  { %1232 = dma.done.wait [#allocation7], 32  }
  0x7d   :  { %1233 = vsyncadd [#allocation7], 4294967264 }
  0x7e   :  { %1234 = dma.done.wait [#allocation10], 3088  }
  0x7f   :  { %1235 = vsyncadd [#allocation10], 4294964208 }
  0x80   :  { %1236 = dma.done.wait [#allocation13], 2064  }
  0x81   :  { %1237 = vsyncadd [#allocation13], 4294965232  ;;  %v1251_v0 = vmov 0.0   ;;  %vm1252_vm0 = vmmov 0   ;;  %v1029_v1 = vld [vmem:[#allocation9 + $0x40] sm:$0xff]   ;;  %v1030_v2 = vld [vmem:[#allocation9 + $0x48] sm:$0xff]   ;;  %v234_v58 = vlaneseq }
  0x82   :  { %853 = vmatprep.subr.bf16.mxu0 %v1251_v0  ;;  %869 = vmatprep.mubr.msk.bf16.mxu0 %vm1252_vm0, %v1251_v0  ;;  %v1031_v3 = vld [vmem:[#allocation9 + $0x50] sm:$0xff]   ;;  %v1038_v4 = vld [vmem:[#allocation9] sm:$0xff]   ;;  %v1032_v5 = vld [vmem:[#allocation9 + $0x58] sm:$0xff]   ;;  %v1253_v31 = vmov 0.0|0.0   ;;  %v1254_v32 = vmov -inf   ;;  %vm634_vm5 = vcmask 1041409  }
  0x83   :  { %873 = vmatprep.subr.bf16.mxu1 %v1251_v0  ;;  %889 = vmatprep.mubr.msk.bf16.mxu1 %vm1252_vm0, %v1251_v0  ;;  %v1039_v6 = vld [vmem:[#allocation9 + $0x8] sm:$0xff]   ;;  %v1033_v7 = vld [vmem:[#allocation9 + $0x60] sm:$0xff]   ;;  %v1040_v8 = vld [vmem:[#allocation9 + $0x10] sm:$0xff]   ;;  %119 = vst [vmem:[#allocation2] sm:$0x3] %v1254_v32  ;;  %v235_v59 = vshrl.u32 %v234_v58, 7 }
  0x84   :  { %854 = vmatpush3.bf16.msra.mxu0 %v1029_v1  ;;  %874 = vmatpush3.bf16.msra.mxu1 %v1038_v4  ;;  %v1034_v9 = vld [vmem:[#allocation9 + $0x68] sm:$0xff]   ;;  %v1041_v10 = vld [vmem:[#allocation9 + $0x18] sm:$0xff]   ;;  %v1035_v11 = vld [vmem:[#allocation9 + $0x70] sm:$0xff]   ;;  %s1256_s6 = smov [#allocation15]  }
  0x85   :  { %855 = vmatprep.subr.bf16.mxu0 %v1251_v0  ;;  %875 = vmatprep.subr.bf16.mxu1 %v1251_v0  ;;  %v1042_v12 = vld [vmem:[#allocation9 + $0x20] sm:$0xff]   ;;  %v1036_v13 = vld [vmem:[#allocation9 + $0x78] sm:$0xff]   ;;  %v1043_v14 = vld [vmem:[#allocation9 + $0x28] sm:$0xff]   ;;  %vm343_vm1 = vcmp.lt.s32.totalorder %v235_v59, 1  ;;  %vm387_vm2 = vcmp.eq.s32.totalorder %v235_v59, 0  ;;  %vm535_vm3 = vcmp.lt.s32.totalorder %v235_v59, 7 }
  0x86   :  { %v1037_v15 = vld [vmem:[#allocation3] sm:$0xff]   ;;  %v1046_v18 = vld [vmem:[#allocation9 + $0x80] sm:$0xff]   ;;  %v1047_v19 = vld [vmem:[#allocation9 + $0x88] sm:$0xff]   ;;  %vm579_vm4 = vcmp.eq.s32.totalorder %v235_v59, 7  ;;  %s752_s15 = sshll.u32 %s1256_s6, 4  ;;  %s753_s15 = int_to_ptr.vmem [resolvable:$true] %s752_s15 }
  0x87   :  { %v1044_v16 = vld [vmem:[#allocation9 + $0x30] sm:$0xff]   ;;  %v1045_v17 = vld [vmem:[#allocation9 + $0x38] sm:$0xff]   ;;  %v1050_v22 = vld [vmem:[#allocation9 + $0xa0] sm:$0xff]   ;;  %s1208_s0 = scalar_lea.vmem %s753_s15, 32  ;;  %p1213_p1 = scmp.lt.s32.totalorder %s753_s15, %s753_s15 }
  0x88   :  { %856 = vmatpush3.bf16.msra.mxu0 %v1030_v2  ;;  %876 = vmatpush3.bf16.msra.mxu1 %v1039_v6  ;;  %v1048_v20 = vld [vmem:[#allocation9 + $0x90] sm:$0xff]   ;;  %v1049_v21 = vld [vmem:[#allocation9 + $0x98] sm:$0xff]   ;;  %v1051_v23 = vld [vmem:[#allocation9 + $0xa8] sm:$0xff]   ;;  %p1209_p0 = scmp.ne.s32.totalorder %s753_s15, %s1208_s0  ;;  %p1214_p2 = scmp.lt.s32.totalorder %s1208_s0, %s1208_s0 }
  0x89   :  { %857 = vmatprep.subr.bf16.mxu0 %v1251_v0  ;;  %877 = vmatprep.subr.bf16.mxu1 %v1251_v0  ;;  %v346_v24 = vld [vmem:[#allocation6] sm:$0x1]  ;;  %v1052_v25 = vld [vmem:[#allocation9 + $0xb0] sm:$0xff]   ;;  %v538_v27 = vld [vmem:[#allocation8] sm:$0x1] }
  0x8a   :  { %v1053_v26 = vld [vmem:[#allocation9 + $0xb8] sm:$0xff]   ;;  %v652_v28 = vld [vmem:[#allocation12] sm:$0xff]  ;;  %v653_v29 = vld [vmem:[#allocation12 + $0x8] sm:$0xff]  ;;  %p1215_p3 = por %p1214_p2, %p1213_p1 }
  0x8b   :  { %v989_v30 = vpack.c.bf16 %v653_v29, %v652_v28  ;;  %v654_v33 = vld [vmem:[#allocation12 + $0x10] sm:$0xff]  ;;  %v655_v34 = vld [vmem:[#allocation12 + $0x18] sm:$0xff]  ;;  %v656_v36 = vld [vmem:[#allocation12 + $0x20] sm:$0xff] }
  0x8c   :  { %858 = vmatpush3.bf16.msra.mxu0 %v1031_v3  ;;  %878 = vmatpush3.bf16.msra.mxu1 %v1040_v8  ;;  %v992_v35 = vpack.c.bf16 %v655_v34, %v654_v33  ;;  %v657_v37 = vld [vmem:[#allocation12 + $0x28] sm:$0xff]  ;;  %v658_v39 = vld [vmem:[#allocation12 + $0x30] sm:$0xff]  ;;  %v659_v40 = vld [vmem:[#allocation12 + $0x38] sm:$0xff]  ;;  %p1216_p4 = pnand %p1215_p3, %p1209_p0 }
  0x8d   :  { %859 = vmatprep.subr.bf16.mxu0 %v1251_v0  ;;  %879 = vmatprep.subr.bf16.mxu1 %v1251_v0  ;;  %v995_v38 = vpack.c.bf16 %v657_v37, %v656_v36  ;;  %v998_v41 = vpack.c.bf16 %v659_v40, %v658_v39  ;;  %v660_v42 = vld [vmem:[#allocation12 + $0x40] sm:$0xff]  ;;  %v661_v43 = vld [vmem:[#allocation12 + $0x48] sm:$0xff]  ;;  %v662_v45 = vld [vmem:[#allocation12 + $0x50] sm:$0xff] }
  0x8e   :  { %v1001_v44 = vpack.c.bf16 %v661_v43, %v660_v42  ;;  %v663_v46 = vld [vmem:[#allocation12 + $0x58] sm:$0xff]  ;;  %v664_v48 = vld [vmem:[#allocation12 + $0x60] sm:$0xff]  ;;  %v665_v49 = vld [vmem:[#allocation12 + $0x68] sm:$0xff] }
  0x8f   :  { %v1004_v47 = vpack.c.bf16 %v663_v46, %v662_v45  ;;  %v1007_v50 = vpack.c.bf16 %v665_v49, %v664_v48  ;;  %v666_v51 = vld [vmem:[#allocation12 + $0x70] sm:$0xff]  ;;  %v667_v52 = vld [vmem:[#allocation12 + $0x78] sm:$0xff] }
  0x90   :  { %860 = vmatpush3.bf16.msra.mxu0 %v1032_v5  ;;  %880 = vmatpush3.bf16.msra.mxu1 %v1041_v10  ;;  %v1010_v53 = vpack.c.bf16 %v667_v52, %v666_v51 }
  0x91   :  { %861 = vmatprep.subr.bf16.mxu0 %v1251_v0  ;;  %881 = vmatprep.subr.bf16.mxu1 %v1251_v0 }
  0x94   :  { %862 = vmatpush3.bf16.msra.mxu0 %v1033_v7  ;;  %882 = vmatpush3.bf16.msra.mxu1 %v1042_v12 }
  0x95   :  { %863 = vmatprep.subr.bf16.mxu0 %v1251_v0  ;;  %883 = vmatprep.subr.bf16.mxu1 %v1251_v0 }
  0x98   :  { %864 = vmatpush3.bf16.msra.mxu0 %v1034_v9  ;;  %884 = vmatpush3.bf16.msra.mxu1 %v1043_v14 }
  0x99   :  { %865 = vmatprep.subr.bf16.mxu0 %v1251_v0  ;;  %885 = vmatprep.subr.bf16.mxu1 %v1251_v0 }
  0x9c   :  { %866 = vmatpush3.bf16.msra.mxu0 %v1035_v11  ;;  %886 = vmatpush3.bf16.msra.mxu1 %v1044_v16 }
  0x9d   :  { %867 = vmatprep.subr.bf16.mxu0 %v1251_v0  ;;  %887 = vmatprep.subr.bf16.mxu1 %v1251_v0 }
  0xa0   :  { %868 = vmatpush3.bf16.msra.mxu0 %v1036_v13  ;;  %888 = vmatpush3.bf16.msra.mxu1 %v1045_v17 }
  0xa1   :  { %893 = vmatprep.subr.bf16.mxu0 %v1251_v0  ;;  %913 = vmatprep.subr.bf16.mxu1 %v1251_v0 }
  0xa3   :  { %870 = vmatmul.mubr.bf16.vlgmr.msra.gmra.mrb[0].mxu0 %v1037_v15  ;;  %890 = vmatmul.mubr.bf16.vlgmr.msra.gmra.mrb[0].mxu1 %v1037_v15 }
  0xa4   :  { %894 = vmatpush3.bf16.msra.mxu0 %v1038_v4  ;;  %909 = vmatprep.mubr.msk.bf16.mxu0 %vm1252_vm0, %v1251_v0  ;;  %v1255_v4 = vmov 1966171168  }
  0xa5   :  { %895 = vmatprep.subr.bf16.mxu0 %v1251_v0  ;;  %914 = vmatpush3.bf16.msra.mxu1 %v1046_v18  ;;  %v390_v5 = vunpack.c.l.s4 %v1255_v4 }
  0xa6   :  { %915 = vmatprep.subr.bf16.mxu1 %v1251_v0  ;;  %929 = vmatprep.mubr.msk.bf16.mxu1 %vm1252_vm0, %v1251_v0 }
  0xa8   :  { %896 = vmatpush3.bf16.msra.mxu0 %v1039_v6  ;;  %v391_v6 = vunpack.c.0.s8 %v390_v5 }
  0xa9   :  { %897 = vmatprep.subr.bf16.mxu0 %v1251_v0  ;;  %916 = vmatpush3.bf16.msra.mxu1 %v1047_v19 }
  0xaa   :  { %917 = vmatprep.subr.bf16.mxu1 %v1251_v0  ;;  %v394_v7 = vsub.s32 %v391_v6, %v235_v59 }
  0xac   :  { %898 = vmatpush3.bf16.msra.mxu0 %v1040_v8 }
  0xad   :  { %899 = vmatprep.subr.bf16.mxu0 %v1251_v0  ;;  %918 = vmatpush3.bf16.msra.mxu1 %v1048_v20 }
  0xae   :  { %919 = vmatprep.subr.bf16.mxu1 %v1251_v0 }
  0xb0   :  { %900 = vmatpush3.bf16.msra.mxu0 %v1041_v10  ;;  %v415_v10 = vsub.s32 0, %v235_v59 }
  0xb1   :  { %901 = vmatprep.subr.bf16.mxu0 %v1251_v0  ;;  %920 = vmatpush3.bf16.msra.mxu1 %v1049_v21 }
  0xb2   :  { %921 = vmatprep.subr.bf16.mxu1 %v1251_v0 }
  0xb4   :  { %902 = vmatpush3.bf16.msra.mxu0 %v1042_v12 }
  0xb5   :  { %903 = vmatprep.subr.bf16.mxu0 %v1251_v0  ;;  %922 = vmatpush3.bf16.msra.mxu1 %v1050_v22 }
  0xb6   :  { %923 = vmatprep.subr.bf16.mxu1 %v1251_v0 }
  0xb8   :  { %904 = vmatpush3.bf16.msra.mxu0 %v1043_v14 }
  0xb9   :  { %905 = vmatprep.subr.bf16.mxu0 %v1251_v0  ;;  %924 = vmatpush3.bf16.msra.mxu1 %v1051_v23 }
  0xba   :  { %925 = vmatprep.subr.bf16.mxu1 %v1251_v0 }
  0xbc   :  { %906 = vmatpush3.bf16.msra.mxu0 %v1044_v16 }
  0xbd   :  { %907 = vmatprep.subr.bf16.mxu0 %v1251_v0  ;;  %926 = vmatpush3.bf16.msra.mxu1 %v1052_v25 }
  0xbe   :  { %927 = vmatprep.subr.bf16.mxu1 %v1251_v0 }
  0xc0   :  { %908 = vmatpush3.bf16.msra.mxu0 %v1045_v17 }
  0xc1   :  { %933 = vmatprep.subr.bf16.mxu0 %v1251_v0  ;;  %928 = vmatpush3.bf16.msra.mxu1 %v1053_v26 }
  0xc2   :  { %988 = vmatprep.subr.bf16.mxu1 %v1253_v31 }
  0xc3   :  { %910 = vmatmul.mubr.bf16.vlgmr.msra.gmra.mrb[4].mxu0 %v346_v24 }
  0xc4   :  { %934 = vmatpush3.bf16.msra.mxu0 %v1046_v18  ;;  %949 = vmatprep.mubr.msk.bf16.mxu0 %vm1252_vm0, %v1251_v0 }
  0xc5   :  { %935 = vmatprep.subr.bf16.mxu0 %v1251_v0  ;;  %930 = vmatmul.mubr.bf16.vlgmr.msra.gmra.mrb[4].mxu1 %v1037_v15 }
  0xc6   :  { %985 = vmatprep.mubr.msk.f32.mxu1 %vm1252_vm0, %v1251_v0  ;;  %990 = vmatpush3.bf16.msra.mxu1 %v989_v30 }
  0xc7   :  { %991 = vmatprep.subr.bf16.mxu1 %v1253_v31 }
  0xc8   :  { %936 = vmatpush3.bf16.msra.mxu0 %v1047_v19 }
  0xc9   :  { %937 = vmatprep.subr.bf16.mxu0 %v1251_v0 }
  0xca   :  { %993 = vmatpush3.bf16.msra.mxu1 %v992_v35 }
  0xcb   :  { %994 = vmatprep.subr.bf16.mxu1 %v1253_v31 }
  0xcc   :  { %938 = vmatpush3.bf16.msra.mxu0 %v1048_v20 }
  0xcd   :  { %939 = vmatprep.subr.bf16.mxu0 %v1251_v0 }
  0xce   :  { %996 = vmatpush3.bf16.msra.mxu1 %v995_v38 }
  0xcf   :  { %997 = vmatprep.subr.bf16.mxu1 %v1253_v31 }
  0xd0   :  { %940 = vmatpush3.bf16.msra.mxu0 %v1049_v21 }
  0xd1   :  { %941 = vmatprep.subr.bf16.mxu0 %v1251_v0 }
  0xd2   :  { %999 = vmatpush3.bf16.msra.mxu1 %v998_v41 }
  0xd3   :  { %1000 = vmatprep.subr.bf16.mxu1 %v1253_v31 }
  0xd4   :  { %942 = vmatpush3.bf16.msra.mxu0 %v1050_v22 }
  0xd5   :  { %943 = vmatprep.subr.bf16.mxu0 %v1251_v0 }
  0xd6   :  { %1002 = vmatpush3.bf16.msra.mxu1 %v1001_v44 }
  0xd7   :  { %1003 = vmatprep.subr.bf16.mxu1 %v1253_v31 }
  0xd8   :  { %944 = vmatpush3.bf16.msra.mxu0 %v1051_v23 }
  0xd9   :  { %945 = vmatprep.subr.bf16.mxu0 %v1251_v0 }
  0xda   :  { %1005 = vmatpush3.bf16.msra.mxu1 %v1004_v47 }
  0xdb   :  { %1006 = vmatprep.subr.bf16.mxu1 %v1253_v31 }
  0xdc   :  { %946 = vmatpush3.bf16.msra.mxu0 %v1052_v25 }
  0xdd   :  { %947 = vmatprep.subr.bf16.mxu0 %v1251_v0 }
  0xde   :  { %1008 = vmatpush3.bf16.msra.mxu1 %v1007_v50 }
  0xdf   :  { %1009 = vmatprep.subr.bf16.mxu1 %v1253_v31 }
  0xe0   :  { %948 = vmatpush3.bf16.msra.mxu0 %v1053_v26 }
  0xe2   :  { %1011 = vmatpush3.bf16.msra.mxu1 %v1010_v53 }
  0xe3   :  { %950 = vmatmul.mubr.bf16.vlgmr.msra.gmra.mrb[8].mxu0 %v538_v27 }
 0x176   :  { %v227_v54 = vpop.f32.mrb[0].mxu0  ;;  %v334_v60 = vpop.f32.mrb[0].mxu1 }
 0x177   :  { %v871_v55 = vpop.f32.mrb[1].mxu0  ;;  %v341_v61 = vrot.slane %v334_v60, 7  ;;  %v891_v62 = vpop.f32.mrb[1].mxu1  ;;  %v789_v60 = vld [vmem:[#allocation11] ss:$0 sm:$0xff] }
 0x178   :  { %v230_v56 = vpop.f32.mrb[2].mxu0  ;;  %v337_v63 = vpop.f32.mrb[2].mxu1  ;;  %v619_v55 = vld [vmem:[#allocation2] sm:$0x3] }
 0x179   :  { %v872_v57 = vpop.f32.mrb[3].mxu0  ;;  %v342_v0 = vrot.slane %v337_v63, 7  ;;  %v892_v1 = vpop.f32.mrb[3].mxu1 }
 0x17b   :  { %v344_v2 = vsel %vm343_vm1, %v341_v61, %v342_v0  ;;  %v345_v3 = vsel %vm343_vm1, %v342_v0, %v341_v61  ;;  %v790_v0 = vld [vmem:[#allocation14] ss:$0 sm:$0xff] }
 0x196   :  { %v381_v8 = vpop.f32.mrb[4].mxu0 }
 0x197   :  { %v395_v9 = vrot.slane %v381_v8, %v394_v7  ;;  %v911_v11 = vpop.f32.mrb[5].mxu0 }
 0x198   :  { %v384_v12 = vpop.f32.mrb[6].mxu0  ;;  %v526_v22 = vpop.f32.mrb[4].mxu1 }
 0x199   :  { %v396_v13 = vcombine.high %v395_v9, %v395_v9  ;;  %v403_v14 = vrot.slane %v395_v9, %v394_v7  ;;  %v912_v15 = vpop.f32.mrb[7].mxu0  ;;  %v533_v24 = vrot.slane %v526_v22, 1  ;;  %v931_v25 = vpop.f32.mrb[5].mxu1 }
 0x19a   :  { %v529_v26 = vpop.f32.mrb[6].mxu1 }
 0x19b   :  { %v410_v16 = vrot.slane %v396_v13, %v394_v7  ;;  %v416_v17 = vrot.slane %v403_v14, %v415_v10  ;;  %v534_v27 = vrot.slane %v529_v26, 1  ;;  %v932_v28 = vpop.f32.mrb[7].mxu1 }
 0x19d   :  { %v420_v18 = vrot.slane %v410_v16, %v415_v10  ;;  %v423_v19 = vsel %vm387_vm2, %v416_v17, %v345_v3  ;;  %v536_v29 = vsel %vm535_vm3, %v533_v24, %v534_v27  ;;  %v537_v30 = vsel %vm535_vm3, %v534_v27, %v533_v24 }
 0x19e   :  { %v425_v20 = vadd.f32 %v423_v19, %v227_v54 }
 0x19f   :  { %v424_v21 = vsel %vm387_vm2, %v420_v18, %v344_v2 }
 0x1a0   :  { %v426_v23 = vadd.f32 %v424_v21, %v230_v56 }
 0x1b6   :  { %v573_v31 = vpop.f32.mrb[8].mxu0 }
 0x1b7   :  { %v587_v32 = vrot.slane %v573_v31, %v394_v7  ;;  %v951_v33 = vpop.f32.mrb[9].mxu0 }
 0x1b8   :  { %v576_v34 = vpop.f32.mrb[10].mxu0 }
 0x1b9   :  { %v588_v35 = vcombine.high %v587_v32, %v587_v32  ;;  %v595_v36 = vrot.slane %v587_v32, %v394_v7  ;;  %v952_v37 = vpop.f32.mrb[11].mxu0 }
 0x1bb   :  { %v602_v38 = vrot.slane %v588_v35, %v394_v7  ;;  %v608_v39 = vrot.slane %v595_v36, %v415_v10 }
 0x1bd   :  { %v612_v40 = vrot.slane %v602_v38, %v415_v10  ;;  %v615_v41 = vsel %vm579_vm4, %v608_v39, %v536_v29 }
 0x1be   :  { %v617_v42 = vadd.f32 %v615_v41, %v425_v20 }
 0x1bf   :  { %v616_v43 = vsel %vm579_vm4, %v612_v40, %v537_v30 }
 0x1c0   :  { %v618_v44 = vadd.f32 %v616_v43, %v426_v23  ;;  %v620_v45 = vrot.slane %v617_v42, 4 }
 0x1c2   :  { %v621_v46 = vmax.f32 %v617_v42, %v620_v45  ;;  %v626_v47 = vrot.slane %v618_v44, 4 }
 0x1c4   :  { %v622_v48 = vrot.slane %v621_v46, 2  ;;  %v627_v49 = vmax.f32 %v618_v44, %v626_v47 }
 0x1c6   :  { %v623_v50 = vmax.f32 %v621_v46, %v622_v48  ;;  %v628_v51 = vrot.slane %v627_v49, 2 }
 0x1c8   :  { %v624_v52 = vrot.slane %v623_v50, 1  ;;  %v629_v53 = vmax.f32 %v627_v49, %v628_v51 }
 0x1ca   :  { %v630_v54 = vrot.slane %v629_v53, 1  ;;  %v625_v56 = vmax.f32 %v623_v50, %v624_v52 }
 0x1cc   :  { %v631_v57 = vmax.f32 %v629_v53, %v630_v54 }
 0x1ce   :  { %v635_v58 = vsel %vm634_vm5, %v631_v57, %v625_v56 }
 0x1cf   :  { %v637_v59 = vmax.f32 %v619_v55, %v635_v58 }
 0x1d1   :  { %638 = vst [vmem:[#allocation2] sm:$0x3] %v637_v59 }
 0x1d8   :  { %v642_v61 = vld [vmem:[#allocation2] sm:$0x3] }
 0x1d9   :  { %v650_v62 = vadd.f32 %v789_v60, %v642_v61 }
 0x1db   :  { %v651_v63 = vmax.f32 %v650_v62, 0.0 }
 0x1dd   :  { %986 = vmatmul.mubr.f32.vlgmr.msra.gmra.mrb[8].mxu1 %v651_v63 }
 0x2b0   :  { %v741_v1 = vpop.f32.mrb[8].mxu1 }
 0x2b1   :  { %v742_v2 = vadd.f32 %v790_v0, %v741_v1  ;;  %v987_v3 = vpop.f32.mrb[9].mxu1 }
 0x2b3   :  { %745 = vst [vmem:[#allocation15] sm:$0x3] %v742_v2 }
 0x2b4   :  { %1219 = shalt.err (!%p1216_p4)
}
 0x2b5   :  { %s1220_s16 = scalar_lea.hbm %s1458_s7, 32 }
 0x2b6   :  { %p1221_p5 = scmp.ne.s32.totalorder %s1458_s7, %s1220_s16  ;;  %p1224_p6 = scmp.lt.u32.totalorder %s1220_s16, %s1458_s7 }
 0x2b8   :  { %p1226_p7 = pnand %p1224_p6, %p1221_p5 }
 0x2ba   :  { %1229 = shalt.err (!%p1226_p7)
}
 0x2bb   :  { %755 = dma.vmem_to_hbm [thread:$0]  %s753_s15, 32, %s1458_s7, [#allocation5]  }
 0x2bc   :  { %1238 = dma.done.wait [#allocation5], 32  }
 0x2bd   :  { %1239 = vsyncadd [#allocation5], 4294967264 }
 0x2be   :  { %759 = vsyncpa [#allocation4], 1 }
 0x2bf   :  { %760 = vsyncpa [#allocation7], 1 }
 0x2c0   :  { %761 = vsyncpa [#allocation10], 1 }
 0x2c1   :  { %762 = vsyncpa [#allocation13], 1 }
 0x2c2   :  { %763 = vsyncpa [#allocation5], 1 }

// kernel: tpu_custom_call.1
= control target key start
LH: loop header
LB: loop body
LE: loop exit
PB: predicated region body
PF: predicated region fallthrough
CT: control target
= control target key end

     0   :  { %12 = vsyncpa [#allocation4], 0  ;;  %s1451_s0 = inlined_call_operand.hbm [shape: bf16[2,8,128], index: 0, kind: input, shape index: {}]   ;;  %s1452_s1 = inlined_call_operand.hbm [shape: bf16[1,2,128], index: 1, kind: input, shape index: {}]   ;;  %s1453_s2 = inlined_call_operand.hbm [shape: bf16[1,2,128], index: 2, kind: input, shape index: {}]   ;;  %s1454_s3 = inlined_call_operand.hbm [shape: bf16[3,128,128], index: 3, kind: input, shape index: {}]   ;;  %s1455_s4 = inlined_call_operand.hbm [shape: f32[1,128], index: 4, kind: input, shape index: {}]   ;;  %s1456_s5 = inlined_call_operand.hbm [shape: f32[128,128], index: 5, kind: input, shape index: {}]   ;;  %s1457_s6 = inlined_call_operand.hbm [shape: f32[1,128], index: 6, kind: input, shape index: {}]   ;;  %s1458_s7 = inlined_call_operand.hbm [shape: f32[2,128], index: 7, kind: output, shape index: {}]  }
   0x1   :  { %13 = vsyncpa [#allocation7], 0 }
   0x2   :  { %14 = vsyncpa [#allocation10], 0 }
   0x3   :  { %15 = vsyncpa [#allocation13], 0 }
   0x4   :  { %16 = vsyncpa [#allocation5], 0  ;;  %s1240_s24 = smov [#allocation6]   ;;  %s1054_s28 = scalar_lea.hbm %s1452_s1, 16 }
   0x5   :  { %s35_s25 = sshll.u32 %s1240_s24, 4  ;;  %p1055_p0 = scmp.ne.s32.totalorder %s1452_s1, %s1054_s28  ;;  %s36_s25 = int_to_ptr.vmem [resolvable:$true] %s35_s25 }
   0x6   :  { %p1058_p1 = scmp.lt.u32.totalorder %s1054_s28, %s1452_s1 }
   0x8   :  { %p1060_p2 = pnand %p1058_p1, %p1055_p0 }
   0xa   :  { %1063 = shalt.err (!%p1060_p2)
}
   0xb   :  { %s1064_s10 = scalar_lea.vmem %s36_s25, 16  ;;  %s1068_s11 = scalar_lea.vmem %s36_s25, 32 }
   0xc   :  { %p1065_p3 = scmp.ne.s32.totalorder %s36_s25, %s1064_s10  ;;  %p1069_p4 = scmp.lt.s32.totalorder %s36_s25, %s36_s25 }
   0xd   :  { %p1070_p5 = scmp.lt.s32.totalorder %s1068_s11, %s1064_s10 }
   0xf   :  { %p1071_p6 = por %p1070_p5, %p1069_p4 }
  0x11   :  { %p1072_p7 = pnand %p1071_p6, %p1065_p3 }
  0x13   :  { %1075 = shalt.err (!%p1072_p7)
}
  0x14   :  { %38 = dma.hbm_to_vmem [thread:$0]  %s1452_s1, 16, %s36_s25, [#allocation7]  }
  0x15   :  { %s1241_s14 = smov [#allocation9]   ;;  %s1242_s16 = smov [#allocation12]  }
  0x16   :  { %s54_s15 = sshll.u32 %s1241_s14, 4  ;;  %s76_s17 = sshll.u32 %s1242_s16, 4  ;;  %s55_s15 = int_to_ptr.vmem [resolvable:$true] %s54_s15  ;;  %s77_s17 = int_to_ptr.vmem [resolvable:$true] %s76_s17 }
  0x17   :  { %s1076_s20 = scalar_lea.hbm %s1454_s3, 3072 }
  0x18   :  { %p1077_p8 = scmp.ne.s32.totalorder %s1454_s3, %s1076_s20  ;;  %p1080_p9 = scmp.lt.u32.totalorder %s1076_s20, %s1454_s3 }
  0x1a   :  { %p1082_p10 = pnand %p1080_p9, %p1077_p8 }
  0x1c   :  { %1085 = shalt.err (!%p1082_p10)
}
  0x1d   :  { %s1086_s1 = scalar_lea.vmem %s55_s15, 3072  ;;  %p1091_p12 = scmp.lt.s32.totalorder %s55_s15, %s55_s15 }
  0x1e   :  { %p1087_p11 = scmp.ne.s32.totalorder %s55_s15, %s1086_s1  ;;  %p1092_p13 = scmp.lt.s32.totalorder %s1086_s1, %s1086_s1 }
  0x20   :  { %p1093_p0 = por %p1092_p13, %p1091_p12 }
  0x22   :  { %p1094_p1 = pnand %p1093_p0, %p1087_p11 }
  0x24   :  { %1097 = shalt.err (!%p1094_p1)
}
  0x25   :  { %s1243_s25 = smov 64   ;;  %s1244_s26 = smov 4  }
  0x26   :  { %60 = dma.hbm_to_vmem [thread:$0]  %s1454_s3, 3072, %s55_s15, [#allocation10], %s1243_s25, %s1243_s25, %s1244_s26  }
  0x27   :  { %s1098_s8 = scalar_lea.hbm %s1456_s5, 2048 }
  0x28   :  { %p1099_p2 = scmp.ne.s32.totalorder %s1456_s5, %s1098_s8  ;;  %p1102_p3 = scmp.lt.u32.totalorder %s1098_s8, %s1456_s5 }
  0x2a   :  { %p1104_p4 = pnand %p1102_p3, %p1099_p2 }
  0x2c   :  { %1107 = shalt.err (!%p1104_p4)
}
  0x2d   :  { %s1108_s13 = scalar_lea.vmem %s77_s17, 2048  ;;  %p1113_p6 = scmp.lt.s32.totalorder %s77_s17, %s77_s17 }
  0x2e   :  { %p1109_p5 = scmp.ne.s32.totalorder %s77_s17, %s1108_s13  ;;  %p1114_p7 = scmp.lt.s32.totalorder %s1108_s13, %s1108_s13 }
  0x30   :  { %p1115_p8 = por %p1114_p7, %p1113_p6 }
  0x32   :  { %p1116_p9 = pnand %p1115_p8, %p1109_p5 }
  0x34   :  { %1119 = shalt.err (!%p1116_p9)
}
  0x35   :  { %s1245_s3 = smov 128   ;;  %s1246_s14 = smov 8  }
  0x36   :  { %82 = dma.hbm_to_vmem [thread:$0]  %s1456_s5, 2048, %s77_s17, [#allocation13], %s1245_s3, %s1245_s3, %s1246_s14  }
  0x37   :  { %s1247_s18 = smov [#allocation3]   ;;  %s1248_s20 = smov [#allocation8]  }
  0x38   :  { %s22_s19 = sshll.u32 %s1247_s18, 4  ;;  %s45_s21 = sshll.u32 %s1248_s20, 4  ;;  %s23_s19 = int_to_ptr.vmem [resolvable:$true] %s22_s19  ;;  %s46_s21 = int_to_ptr.vmem [resolvable:$true] %s45_s21 }
  0x39   :  { %s1120_s24 = scalar_lea.hbm %s1451_s0, 128 }
  0x3a   :  { %p1121_p10 = scmp.ne.s32.totalorder %s1451_s0, %s1120_s24  ;;  %p1124_p11 = scmp.lt.u32.totalorder %s1120_s24, %s1451_s0 }
  0x3c   :  { %p1126_p12 = pnand %p1124_p11, %p1121_p10 }
  0x3e   :  { %1129 = shalt.err (!%p1126_p12)
}
  0x3f   :  { %s1130_s5 = scalar_lea.vmem %s23_s19, 128  ;;  %p1135_p0 = scmp.lt.s32.totalorder %s23_s19, %s23_s19 }
  0x40   :  { %p1131_p13 = scmp.ne.s32.totalorder %s23_s19, %s1130_s5  ;;  %p1136_p1 = scmp.lt.s32.totalorder %s1130_s5, %s1130_s5 }
  0x42   :  { %p1137_p2 = por %p1136_p1, %p1135_p0 }
  0x44   :  { %p1138_p3 = pnand %p1137_p2, %p1131_p13 }
  0x46   :  { %1141 = shalt.err (!%p1138_p3)
}
  0x47   :  { %28 = dma.hbm_to_vmem [thread:$0]  %s1451_s0, 128, %s23_s19, [#allocation4], %s1243_s25, %s1243_s25, %s1244_s26  }
  0x48   :  { %s1142_s10 = scalar_lea.hbm %s1453_s2, 16 }
  0x49   :  { %p1143_p4 = scmp.ne.s32.totalorder %s1453_s2, %s1142_s10  ;;  %p1146_p5 = scmp.lt.u32.totalorder %s1142_s10, %s1453_s2 }
  0x4b   :  { %p1148_p6 = pnand %p1146_p5, %p1143_p4 }
  0x4d   :  { %1151 = shalt.err (!%p1148_p6)
}
  0x4e   :  { %s1152_s14 = scalar_lea.vmem %s46_s21, 16  ;;  %s1156_s15 = scalar_lea.vmem %s46_s21, 32 }
  0x4f   :  { %p1153_p7 = scmp.ne.s32.totalorder %s46_s21, %s1152_s14  ;;  %p1157_p8 = scmp.lt.s32.totalorder %s46_s21, %s46_s21 }
  0x50   :  { %p1158_p9 = scmp.lt.s32.totalorder %s1156_s15, %s1152_s14 }
  0x52   :  { %p1159_p10 = por %p1158_p9, %p1157_p8 }
  0x54   :  { %p1160_p11 = pnand %p1159_p10, %p1153_p7 }
  0x56   :  { %1163 = shalt.err (!%p1160_p11)
}
  0x57   :  { %48 = dma.hbm_to_vmem [thread:$0]  %s1453_s2, 16, %s46_s21, [#allocation7]  }
  0x58   :  { %s1249_s26 = smov [#allocation11]   ;;  %s1250_s18 = smov [#allocation14]  }
  0x59   :  { %s67_s16 = sshll.u32 %s1249_s26, 4  ;;  %s89_s19 = sshll.u32 %s1250_s18, 4  ;;  %s68_s16 = int_to_ptr.vmem [resolvable:$true] %s67_s16  ;;  %s90_s19 = int_to_ptr.vmem [resolvable:$true] %s89_s19 }
  0x5a   :  { %s1164_s23 = scalar_lea.hbm %s1455_s4, 16 }
  0x5b   :  { %p1165_p12 = scmp.ne.s32.totalorder %s1455_s4, %s1164_s23  ;;  %p1168_p13 = scmp.lt.u32.totalorder %s1164_s23, %s1455_s4 }
  0x5d   :  { %p1170_p0 = pnand %p1168_p13, %p1165_p12 }
  0x5f   :  { %1173 = shalt.err (!%p1170_p0)
}
  0x60   :  { %s1174_s2 = scalar_lea.vmem %s68_s16, 16  ;;  %s1178_s21 = scalar_lea.vmem %s68_s16, 32 }
  0x61   :  { %p1175_p1 = scmp.ne.s32.totalorder %s68_s16, %s1174_s2  ;;  %p1179_p2 = scmp.lt.s32.totalorder %s68_s16, %s68_s16 }
  0x62   :  { %p1180_p3 = scmp.lt.s32.totalorder %s1178_s21, %s1174_s2 }
  0x64   :  { %p1181_p4 = por %p1180_p3, %p1179_p2 }
  0x66   :  { %p1182_p5 = pnand %p1181_p4, %p1175_p1 }
  0x68   :  { %1185 = shalt.err (!%p1182_p5)
}
  0x69   :  { %70 = dma.hbm_to_vmem [thread:$0]  %s1455_s4, 16, %s68_s16, [#allocation10]  }
  0x6a   :  { %s1186_s8 = scalar_lea.hbm %s1457_s6, 16 }
  0x6b   :  { %p1187_p6 = scmp.ne.s32.totalorder %s1457_s6, %s1186_s8  ;;  %p1190_p7 = scmp.lt.u32.totalorder %s1186_s8, %s1457_s6 }
  0x6d   :  { %p1192_p8 = pnand %p1190_p7, %p1187_p6 }
  0x6f   :  { %1195 = shalt.err (!%p1192_p8)
}
  0x70   :  { %s1196_s13 = scalar_lea.vmem %s90_s19, 16  ;;  %s1200_s3 = scalar_lea.vmem %s90_s19, 32 }
  0x71   :  { %p1197_p9 = scmp.ne.s32.totalorder %s90_s19, %s1196_s13  ;;  %p1201_p10 = scmp.lt.s32.totalorder %s90_s19, %s90_s19 }
  0x72   :  { %p1202_p11 = scmp.lt.s32.totalorder %s1200_s3, %s1196_s13 }
  0x74   :  { %p1203_p12 = por %p1202_p11, %p1201_p10 }
  0x76   :  { %p1204_p13 = pnand %p1203_p12, %p1197_p9 }
  0x78   :  { %1207 = shalt.err (!%p1204_p13)
}
  0x79   :  { %92 = dma.hbm_to_vmem [thread:$0]  %s1457_s6, 16, %s90_s19, [#allocation13]  }
  0x7a   :  { %1230 = dma.done.wait [#allocation4], 128  }
  0x7b   :  { %1231 = vsyncadd [#allocation4], 4294967168 }
  0x7c   :  { %1232 = dma.done.wait [#allocation7], 32  }
  0x7d   :  { %1233 = vsyncadd [#allocation7], 4294967264 }
  0x7e   :  { %1234 = dma.done.wait [#allocation10], 3088  }
  0x7f   :  { %1235 = vsyncadd [#allocation10], 4294964208 }
  0x80   :  { %1236 = dma.done.wait [#allocation13], 2064  }
  0x81   :  { %1237 = vsyncadd [#allocation13], 4294965232  ;;  %v1251_v0 = vmov 0.0   ;;  %vm1252_vm0 = vmmov 0   ;;  %v1029_v1 = vld [vmem:[#allocation9 + $0x40] sm:$0xff]   ;;  %v1030_v2 = vld [vmem:[#allocation9 + $0x48] sm:$0xff]   ;;  %v234_v58 = vlaneseq }
  0x82   :  { %853 = vmatprep.subr.bf16.mxu0 %v1251_v0  ;;  %869 = vmatprep.mubr.msk.bf16.mxu0 %vm1252_vm0, %v1251_v0  ;;  %v1031_v3 = vld [vmem:[#allocation9 + $0x50] sm:$0xff]   ;;  %v1038_v4 = vld [vmem:[#allocation9] sm:$0xff]   ;;  %v1032_v5 = vld [vmem:[#allocation9 + $0x58] sm:$0xff]   ;;  %v1253_v31 = vmov 0.0|0.0   ;;  %v1254_v32 = vmov -inf   ;;  %vm634_vm5 = vcmask 1041409  }
  0x83   :  { %873 = vmatprep.subr.bf16.mxu1 %v1251_v0  ;;  %889 = vmatprep.mubr.msk.bf16.mxu1 %vm1252_vm0, %v1251_v0  ;;  %v1039_v6 = vld [vmem:[#allocation9 + $0x8] sm:$0xff]   ;;  %v1033_v7 = vld [vmem:[#allocation9 + $0x60] sm:$0xff]   ;;  %v1040_v8 = vld [vmem:[#allocation9 + $0x10] sm:$0xff]   ;;  %119 = vst [vmem:[#allocation2] sm:$0x3] %v1254_v32  ;;  %v235_v59 = vshrl.u32 %v234_v58, 7 }
  0x84   :  { %854 = vmatpush3.bf16.msra.mxu0 %v1029_v1  ;;  %874 = vmatpush3.bf16.msra.mxu1 %v1038_v4  ;;  %v1034_v9 = vld [vmem:[#allocation9 + $0x68] sm:$0xff]   ;;  %v1041_v10 = vld [vmem:[#allocation9 + $0x18] sm:$0xff]   ;;  %v1035_v11 = vld [vmem:[#allocation9 + $0x70] sm:$0xff]   ;;  %s1256_s6 = smov [#allocation15]  }
  0x85   :  { %855 = vmatprep.subr.bf16.mxu0 %v1251_v0  ;;  %875 = vmatprep.subr.bf16.mxu1 %v1251_v0  ;;  %v1042_v12 = vld [vmem:[#allocation9 + $0x20] sm:$0xff]   ;;  %v1036_v13 = vld [vmem:[#allocation9 + $0x78] sm:$0xff]   ;;  %v1043_v14 = vld [vmem:[#allocation9 + $0x28] sm:$0xff]   ;;  %vm343_vm1 = vcmp.lt.s32.totalorder %v235_v59, 1  ;;  %vm387_vm2 = vcmp.eq.s32.totalorder %v235_v59, 0  ;;  %vm535_vm3 = vcmp.lt.s32.totalorder %v235_v59, 7 }
  0x86   :  { %v1037_v15 = vld [vmem:[#allocation3] sm:$0xff]   ;;  %v1046_v18 = vld [vmem:[#allocation9 + $0x80] sm:$0xff]   ;;  %v1047_v19 = vld [vmem:[#allocation9 + $0x88] sm:$0xff]   ;;  %vm579_vm4 = vcmp.eq.s32.totalorder %v235_v59, 7  ;;  %s752_s15 = sshll.u32 %s1256_s6, 4  ;;  %s753_s15 = int_to_ptr.vmem [resolvable:$true] %s752_s15 }
  0x87   :  { %v1044_v16 = vld [vmem:[#allocation9 + $0x30] sm:$0xff]   ;;  %v1045_v17 = vld [vmem:[#allocation9 + $0x38] sm:$0xff]   ;;  %v1050_v22 = vld [vmem:[#allocation9 + $0xa0] sm:$0xff]   ;;  %s1208_s0 = scalar_lea.vmem %s753_s15, 32  ;;  %p1213_p1 = scmp.lt.s32.totalorder %s753_s15, %s753_s15 }
  0x88   :  { %856 = vmatpush3.bf16.msra.mxu0 %v1030_v2  ;;  %876 = vmatpush3.bf16.msra.mxu1 %v1039_v6  ;;  %v1048_v20 = vld [vmem:[#allocation9 + $0x90] sm:$0xff]   ;;  %v1049_v21 = vld [vmem:[#allocation9 + $0x98] sm:$0xff]   ;;  %v1051_v23 = vld [vmem:[#allocation9 + $0xa8] sm:$0xff]   ;;  %p1209_p0 = scmp.ne.s32.totalorder %s753_s15, %s1208_s0  ;;  %p1214_p2 = scmp.lt.s32.totalorder %s1208_s0, %s1208_s0 }
  0x89   :  { %857 = vmatprep.subr.bf16.mxu0 %v1251_v0  ;;  %877 = vmatprep.subr.bf16.mxu1 %v1251_v0  ;;  %v346_v24 = vld [vmem:[#allocation6] sm:$0x1]  ;;  %v1052_v25 = vld [vmem:[#allocation9 + $0xb0] sm:$0xff]   ;;  %v538_v27 = vld [vmem:[#allocation8] sm:$0x1] }
  0x8a   :  { %v1053_v26 = vld [vmem:[#allocation9 + $0xb8] sm:$0xff]   ;;  %v652_v28 = vld [vmem:[#allocation12] sm:$0xff]  ;;  %v653_v29 = vld [vmem:[#allocation12 + $0x8] sm:$0xff]  ;;  %p1215_p3 = por %p1214_p2, %p1213_p1 }
  0x8b   :  { %v989_v30 = vpack.c.bf16 %v653_v29, %v652_v28  ;;  %v654_v33 = vld [vmem:[#allocation12 + $0x10] sm:$0xff]  ;;  %v655_v34 = vld [vmem:[#allocation12 + $0x18] sm:$0xff]  ;;  %v656_v36 = vld [vmem:[#allocation12 + $0x20] sm:$0xff] }
  0x8c   :  { %858 = vmatpush3.bf16.msra.mxu0 %v1031_v3  ;;  %878 = vmatpush3.bf16.msra.mxu1 %v1040_v8  ;;  %v992_v35 = vpack.c.bf16 %v655_v34, %v654_v33  ;;  %v657_v37 = vld [vmem:[#allocation12 + $0x28] sm:$0xff]  ;;  %v658_v39 = vld [vmem:[#allocation12 + $0x30] sm:$0xff]  ;;  %v659_v40 = vld [vmem:[#allocation12 + $0x38] sm:$0xff]  ;;  %p1216_p4 = pnand %p1215_p3, %p1209_p0 }
  0x8d   :  { %859 = vmatprep.subr.bf16.mxu0 %v1251_v0  ;;  %879 = vmatprep.subr.bf16.mxu1 %v1251_v0  ;;  %v995_v38 = vpack.c.bf16 %v657_v37, %v656_v36  ;;  %v998_v41 = vpack.c.bf16 %v659_v40, %v658_v39  ;;  %v660_v42 = vld [vmem:[#allocation12 + $0x40] sm:$0xff]  ;;  %v661_v43 = vld [vmem:[#allocation12 + $0x48] sm:$0xff]  ;;  %v662_v45 = vld [vmem:[#allocation12 + $0x50] sm:$0xff] }
  0x8e   :  { %v1001_v44 = vpack.c.bf16 %v661_v43, %v660_v42  ;;  %v663_v46 = vld [vmem:[#allocation12 + $0x58] sm:$0xff]  ;;  %v664_v48 = vld [vmem:[#allocation12 + $0x60] sm:$0xff]  ;;  %v665_v49 = vld [vmem:[#allocation12 + $0x68] sm:$0xff] }
  0x8f   :  { %v1004_v47 = vpack.c.bf16 %v663_v46, %v662_v45  ;;  %v1007_v50 = vpack.c.bf16 %v665_v49, %v664_v48  ;;  %v666_v51 = vld [vmem:[#allocation12 + $0x70] sm:$0xff]  ;;  %v667_v52 = vld [vmem:[#allocation12 + $0x78] sm:$0xff] }
  0x90   :  { %860 = vmatpush3.bf16.msra.mxu0 %v1032_v5  ;;  %880 = vmatpush3.bf16.msra.mxu1 %v1041_v10  ;;  %v1010_v53 = vpack.c.bf16 %v667_v52, %v666_v51 }
  0x91   :  { %861 = vmatprep.subr.bf16.mxu0 %v1251_v0  ;;  %881 = vmatprep.subr.bf16.mxu1 %v1251_v0 }
  0x94   :  { %862 = vmatpush3.bf16.msra.mxu0 %v1033_v7  ;;  %882 = vmatpush3.bf16.msra.mxu1 %v1042_v12 }
  0x95   :  { %863 = vmatprep.subr.bf16.mxu0 %v1251_v0  ;;  %883 = vmatprep.subr.bf16.mxu1 %v1251_v0 }
  0x98   :  { %864 = vmatpush3.bf16.msra.mxu0 %v1034_v9  ;;  %884 = vmatpush3.bf16.msra.mxu1 %v1043_v14 }
  0x99   :  { %865 = vmatprep.subr.bf16.mxu0 %v1251_v0  ;;  %885 = vmatprep.subr.bf16.mxu1 %v1251_v0 }
  0x9c   :  { %866 = vmatpush3.bf16.msra.mxu0 %v1035_v11  ;;  %886 = vmatpush3.bf16.msra.mxu1 %v1044_v16 }
  0x9d   :  { %867 = vmatprep.subr.bf16.mxu0 %v1251_v0  ;;  %887 = vmatprep.subr.bf16.mxu1 %v1251_v0 }
  0xa0   :  { %868 = vmatpush3.bf16.msra.mxu0 %v1036_v13  ;;  %888 = vmatpush3.bf16.msra.mxu1 %v1045_v17 }
  0xa1   :  { %893 = vmatprep.subr.bf16.mxu0 %v1251_v0  ;;  %913 = vmatprep.subr.bf16.mxu1 %v1251_v0 }
  0xa3   :  { %870 = vmatmul.mubr.bf16.vlgmr.msra.gmra.mrb[0].mxu0 %v1037_v15  ;;  %890 = vmatmul.mubr.bf16.vlgmr.msra.gmra.mrb[0].mxu1 %v1037_v15 }
  0xa4   :  { %894 = vmatpush3.bf16.msra.mxu0 %v1038_v4  ;;  %909 = vmatprep.mubr.msk.bf16.mxu0 %vm1252_vm0, %v1251_v0  ;;  %v1255_v4 = vmov 1966171168  }
  0xa5   :  { %895 = vmatprep.subr.bf16.mxu0 %v1251_v0  ;;  %914 = vmatpush3.bf16.msra.mxu1 %v1046_v18  ;;  %v390_v5 = vunpack.c.l.s4 %v1255_v4 }
  0xa6   :  { %915 = vmatprep.subr.bf16.mxu1 %v1251_v0  ;;  %929 = vmatprep.mubr.msk.bf16.mxu1 %vm1252_vm0, %v1251_v0 }
  0xa8   :  { %896 = vmatpush3.bf16.msra.mxu0 %v1039_v6  ;;  %v391_v6 = vunpack.c.0.s8 %v390_v5 }
  0xa9   :  { %897 = vmatprep.subr.bf16.mxu0 %v1251_v0  ;;  %916 = vmatpush3.bf16.msra.mxu1 %v1047_v19 }
  0xaa   :  { %917 = vmatprep.subr.bf16.mxu1 %v1251_v0  ;;  %v394_v7 = vsub.s32 %v391_v6, %v235_v59 }
  0xac   :  { %898 = vmatpush3.bf16.msra.mxu0 %v1040_v8 }
  0xad   :  { %899 = vmatprep.subr.bf16.mxu0 %v1251_v0  ;;  %918 = vmatpush3.bf16.msra.mxu1 %v1048_v20 }
  0xae   :  { %919 = vmatprep.subr.bf16.mxu1 %v1251_v0 }
  0xb0   :  { %900 = vmatpush3.bf16.msra.mxu0 %v1041_v10  ;;  %v415_v10 = vsub.s32 0, %v235_v59 }
  0xb1   :  { %901 = vmatprep.subr.bf16.mxu0 %v1251_v0  ;;  %920 = vmatpush3.bf16.msra.mxu1 %v1049_v21 }
  0xb2   :  { %921 = vmatprep.subr.bf16.mxu1 %v1251_v0 }
  0xb4   :  { %902 = vmatpush3.bf16.msra.mxu0 %v1042_v12 }
  0xb5   :  { %903 = vmatprep.subr.bf16.mxu0 %v1251_v0  ;;  %922 = vmatpush3.bf16.msra.mxu1 %v1050_v22 }
  0xb6   :  { %923 = vmatprep.subr.bf16.mxu1 %v1251_v0 }
  0xb8   :  { %904 = vmatpush3.bf16.msra.mxu0 %v1043_v14 }
  0xb9   :  { %905 = vmatprep.subr.bf16.mxu0 %v1251_v0  ;;  %924 = vmatpush3.bf16.msra.mxu1 %v1051_v23 }
  0xba   :  { %925 = vmatprep.subr.bf16.mxu1 %v1251_v0 }
  0xbc   :  { %906 = vmatpush3.bf16.msra.mxu0 %v1044_v16 }
  0xbd   :  { %907 = vmatprep.subr.bf16.mxu0 %v1251_v0  ;;  %926 = vmatpush3.bf16.msra.mxu1 %v1052_v25 }
  0xbe   :  { %927 = vmatprep.subr.bf16.mxu1 %v1251_v0 }
  0xc0   :  { %908 = vmatpush3.bf16.msra.mxu0 %v1045_v17 }
  0xc1   :  { %933 = vmatprep.subr.bf16.mxu0 %v1251_v0  ;;  %928 = vmatpush3.bf16.msra.mxu1 %v1053_v26 }
  0xc2   :  { %988 = vmatprep.subr.bf16.mxu1 %v1253_v31 }
  0xc3   :  { %910 = vmatmul.mubr.bf16.vlgmr.msra.gmra.mrb[4].mxu0 %v346_v24 }
  0xc4   :  { %934 = vmatpush3.bf16.msra.mxu0 %v1046_v18  ;;  %949 = vmatprep.mubr.msk.bf16.mxu0 %vm1252_vm0, %v1251_v0 }
  0xc5   :  { %935 = vmatprep.subr.bf16.mxu0 %v1251_v0  ;;  %930 = vmatmul.mubr.bf16.vlgmr.msra.gmra.mrb[4].mxu1 %v1037_v15 }
  0xc6   :  { %985 = vmatprep.mubr.msk.f32.mxu1 %vm1252_vm0, %v1251_v0  ;;  %990 = vmatpush3.bf16.msra.mxu1 %v989_v30 }
  0xc7   :  { %991 = vmatprep.subr.bf16.mxu1 %v1253_v31 }
  0xc8   :  { %936 = vmatpush3.bf16.msra.mxu0 %v1047_v19 }
  0xc9   :  { %937 = vmatprep.subr.bf16.mxu0 %v1251_v0 }
  0xca   :  { %993 = vmatpush3.bf16.msra.mxu1 %v992_v35 }
  0xcb   :  { %994 = vmatprep.subr.bf16.mxu1 %v1253_v31 }
  0xcc   :  { %938 = vmatpush3.bf16.msra.mxu0 %v1048_v20 }
  0xcd   :  { %939 = vmatprep.subr.bf16.mxu0 %v1251_v0 }
  0xce   :  { %996 = vmatpush3.bf16.msra.mxu1 %v995_v38 }
  0xcf   :  { %997 = vmatprep.subr.bf16.mxu1 %v1253_v31 }
  0xd0   :  { %940 = vmatpush3.bf16.msra.mxu0 %v1049_v21 }
  0xd1   :  { %941 = vmatprep.subr.bf16.mxu0 %v1251_v0 }
  0xd2   :  { %999 = vmatpush3.bf16.msra.mxu1 %v998_v41 }
  0xd3   :  { %1000 = vmatprep.subr.bf16.mxu1 %v1253_v31 }
  0xd4   :  { %942 = vmatpush3.bf16.msra.mxu0 %v1050_v22 }
  0xd5   :  { %943 = vmatprep.subr.bf16.mxu0 %v1251_v0 }
  0xd6   :  { %1002 = vmatpush3.bf16.msra.mxu1 %v1001_v44 }
  0xd7   :  { %1003 = vmatprep.subr.bf16.mxu1 %v1253_v31 }
  0xd8   :  { %944 = vmatpush3.bf16.msra.mxu0 %v1051_v23 }
  0xd9   :  { %945 = vmatprep.subr.bf16.mxu0 %v1251_v0 }
  0xda   :  { %1005 = vmatpush3.bf16.msra.mxu1 %v1004_v47 }
  0xdb   :  { %1006 = vmatprep.subr.bf16.mxu1 %v1253_v31 }
  0xdc   :  { %946 = vmatpush3.bf16.msra.mxu0 %v1052_v25 }
  0xdd   :  { %947 = vmatprep.subr.bf16.mxu0 %v1251_v0 }
  0xde   :  { %1008 = vmatpush3.bf16.msra.mxu1 %v1007_v50 }
  0xdf   :  { %1009 = vmatprep.subr.bf16.mxu1 %v1253_v31 }
  0xe0   :  { %948 = vmatpush3.bf16.msra.mxu0 %v1053_v26 }
  0xe2   :  { %1011 = vmatpush3.bf16.msra.mxu1 %v1010_v53 }
  0xe3   :  { %950 = vmatmul.mubr.bf16.vlgmr.msra.gmra.mrb[8].mxu0 %v538_v27 }
 0x176   :  { %v227_v54 = vpop.f32.mrb[0].mxu0  ;;  %v334_v60 = vpop.f32.mrb[0].mxu1 }
 0x177   :  { %v871_v55 = vpop.f32.mrb[1].mxu0  ;;  %v341_v61 = vrot.slane %v334_v60, 7  ;;  %v891_v62 = vpop.f32.mrb[1].mxu1  ;;  %v789_v60 = vld [vmem:[#allocation11] ss:$0 sm:$0xff] }
 0x178   :  { %v230_v56 = vpop.f32.mrb[2].mxu0  ;;  %v337_v63 = vpop.f32.mrb[2].mxu1  ;;  %v619_v55 = vld [vmem:[#allocation2] sm:$0x3] }
 0x179   :  { %v872_v57 = vpop.f32.mrb[3].mxu0  ;;  %v342_v0 = vrot.slane %v337_v63, 7  ;;  %v892_v1 = vpop.f32.mrb[3].mxu1 }
 0x17b   :  { %v344_v2 = vsel %vm343_vm1, %v341_v61, %v342_v0  ;;  %v345_v3 = vsel %vm343_vm1, %v342_v0, %v341_v61  ;;  %v790_v0 = vld [vmem:[#allocation14] ss:$0 sm:$0xff] }
 0x196   :  { %v381_v8 = vpop.f32.mrb[4].mxu0 }
 0x197   :  { %v395_v9 = vrot.slane %v381_v8, %v394_v7  ;;  %v911_v11 = vpop.f32.mrb[5].mxu0 }
 0x198   :  { %v384_v12 = vpop.f32.mrb[6].mxu0  ;;  %v526_v22 = vpop.f32.mrb[4].mxu1 }
 0x199   :  { %v396_v13 = vcombine.high %v395_v9, %v395_v9  ;;  %v403_v14 = vrot.slane %v395_v9, %v394_v7  ;;  %v912_v15 = vpop.f32.mrb[7].mxu0  ;;  %v533_v24 = vrot.slane %v526_v22, 1  ;;  %v931_v25 = vpop.f32.mrb[5].mxu1 }
 0x19a   :  { %v529_v26 = vpop.f32.mrb[6].mxu1 }
 0x19b   :  { %v410_v16 = vrot.slane %v396_v13, %v394_v7  ;;  %v416_v17 = vrot.slane %v403_v14, %v415_v10  ;;  %v534_v27 = vrot.slane %v529_v26, 1  ;;  %v932_v28 = vpop.f32.mrb[7].mxu1 }
 0x19d   :  { %v420_v18 = vrot.slane %v410_v16, %v415_v10  ;;  %v423_v19 = vsel %vm387_vm2, %v416_v17, %v345_v3  ;;  %v536_v29 = vsel %vm535_vm3, %v533_v24, %v534_v27  ;;  %v537_v30 = vsel %vm535_vm3, %v534_v27, %v533_v24 }
 0x19e   :  { %v425_v20 = vadd.f32 %v423_v19, %v227_v54 }
 0x19f   :  { %v424_v21 = vsel %vm387_vm2, %v420_v18, %v344_v2 }
 0x1a0   :  { %v426_v23 = vadd.f32 %v424_v21, %v230_v56 }
 0x1b6   :  { %v573_v31 = vpop.f32.mrb[8].mxu0 }
 0x1b7   :  { %v587_v32 = vrot.slane %v573_v31, %v394_v7  ;;  %v951_v33 = vpop.f32.mrb[9].mxu0 }
 0x1b8   :  { %v576_v34 = vpop.f32.mrb[10].mxu0 }
 0x1b9   :  { %v588_v35 = vcombine.high %v587_v32, %v587_v32  ;;  %v595_v36 = vrot.slane %v587_v32, %v394_v7  ;;  %v952_v37 = vpop.f32.mrb[11].mxu0 }
 0x1bb   :  { %v602_v38 = vrot.slane %v588_v35, %v394_v7  ;;  %v608_v39 = vrot.slane %v595_v36, %v415_v10 }
 0x1bd   :  { %v612_v40 = vrot.slane %v602_v38, %v415_v10  ;;  %v615_v41 = vsel %vm579_vm4, %v608_v39, %v536_v29 }
 0x1be   :  { %v617_v42 = vadd.f32 %v615_v41, %v425_v20 }
 0x1bf   :  { %v616_v43 = vsel %vm579_vm4, %v612_v40, %v537_v30 }
 0x1c0   :  { %v618_v44 = vadd.f32 %v616_v43, %v426_v23  ;;  %v620_v45 = vrot.slane %v617_v42, 4 }
 0x1c2   :  { %v621_v46 = vmax.f32 %v617_v42, %v620_v45  ;;  %v626_v47 = vrot.slane %v618_v44, 4 }
 0x1c4   :  { %v622_v48 = vrot.slane %v621_v46, 2  ;;  %v627_v49 = vmax.f32 %v618_v44, %v626_v47 }
 0x1c6   :  { %v623_v50 = vmax.f32 %v621_v46, %v622_v48  ;;  %v628_v51 = vrot.slane %v627_v49, 2 }
 0x1c8   :  { %v624_v52 = vrot.slane %v623_v50, 1  ;;  %v629_v53 = vmax.f32 %v627_v49, %v628_v51 }
 0x1ca   :  { %v630_v54 = vrot.slane %v629_v53, 1  ;;  %v625_v56 = vmax.f32 %v623_v50, %v624_v52 }
 0x1cc   :  { %v631_v57 = vmax.f32 %v629_v53, %v630_v54 }
 0x1ce   :  { %v635_v58 = vsel %vm634_vm5, %v631_v57, %v625_v56 }
 0x1cf   :  { %v637_v59 = vmax.f32 %v619_v55, %v635_v58 }
 0x1d1   :  { %638 = vst [vmem:[#allocation2] sm:$0x3] %v637_v59 }
 0x1d8   :  { %v642_v61 = vld [vmem:[#allocation2] sm:$0x3] }
 0x1d9   :  { %v650_v62 = vadd.f32 %v789_v60, %v642_v61 }
 0x1db   :  { %v651_v63 = vmax.f32 %v650_v62, 0.0 }
 0x1dd   :  { %986 = vmatmul.mubr.f32.vlgmr.msra.gmra.mrb[8].mxu1 %v651_v63 }
 0x2b0   :  { %v741_v1 = vpop.f32.mrb[8].mxu1 }
 0x2b1   :  { %v742_v2 = vadd.f32 %v790_v0, %v741_v1  ;;  %v987_v3 = vpop.f32.mrb[9].mxu1 }
 0x2b3   :  { %745 = vst [vmem:[#allocation15] sm:$0x3] %v742_v2 }
 0x2b4   :  { %1219 = shalt.err (!%p1216_p4)
}
 0x2b5   :  { %s1220_s16 = scalar_lea.hbm %s1458_s7, 32 }
 0x2b6   :  { %p1221_p5 = scmp.ne.s32.totalorder %s1458_s7, %s1220_s16  ;;  %p1224_p6 = scmp.lt.u32.totalorder %s1220_s16, %s1458_s7 }
 0x2b8   :  { %p1226_p7 = pnand %p1224_p6, %p1221_p5 }
 0x2ba   :  { %1229 = shalt.err (!%p1226_p7)
}
 0x2bb   :  { %755 = dma.vmem_to_hbm [thread:$0]  %s753_s15, 32, %s1458_s7, [#allocation5]  }
 0x2bc   :  { %1238 = dma.done.wait [#allocation5], 32  }
 0x2bd   :  { %1239 = vsyncadd [#allocation5], 4294967264 }
 0x2be   :  { %759 = vsyncpa [#allocation4], 1 }
 0x2bf   :  { %760 = vsyncpa [#allocation7], 1 }
 0x2c0   :  { %761 = vsyncpa [#allocation10], 1 }
 0x2c1   :  { %762 = vsyncpa [#allocation13], 1 }
 0x2c2   :  { %763 = vsyncpa [#allocation5], 1 }

</bundles_post_ra>
